<compile_context>
chip_gen: v7x
topology: tpu7x:2x2x1
jax: 0.10.0
libtpu: 0.0.40
codegen_flags: <defaults>
</compile_context>

<pallas_src>
import functools

import jax
import jax.numpy as jnp
from jax.experimental import pallas as pl
from jax.experimental.pallas import tpu as pltpu

_VMEM_LIMIT = 32 * 1024 * 1024


# ----------------------------------------------------------------------------
# Small helpers
# ----------------------------------------------------------------------------
def _round_up(x, m):
    return (x + m - 1) // m * m


def _gelu_tanh(x):
    c = 0.7978845608028654  # sqrt(2/pi)
    return 0.5 * x * (1.0 + jnp.tanh(c * (x + 0.044715 * x * x * x)))


def _apply_act(y, act):
    if act == "gelu":
        return _gelu_tanh(y)
    return y


# ----------------------------------------------------------------------------
# Pallas kernels
# ----------------------------------------------------------------------------
def _mm_bias_kernel(x_ref, w_ref, b_ref, o_ref, acc_ref, *, act):
    """Tiled matmul: o = act(x @ w + b). bf16 inputs, f32 accumulator."""
    @pl.when(pl.program_id(2) == 0)
    def _():
        acc_ref[...] = jnp.zeros_like(acc_ref)

    acc_ref[...] += jnp.dot(x_ref[...], w_ref[...],
                            preferred_element_type=jnp.float32)

    @pl.when(pl.program_id(2) == pl.num_programs(2) - 1)
    def _():
        y = _apply_act(acc_ref[...] + b_ref[...], act)
        o_ref[...] = y.astype(o_ref.dtype)


def _mm_bias_res_kernel(x_ref, w_ref, b_ref, r_ref, o_ref, acc_ref, *, act):
    """Tiled matmul with fused residual add: o = act(x @ w + b + r)."""
    @pl.when(pl.program_id(2) == 0)
    def _():
        acc_ref[...] = jnp.zeros_like(acc_ref)

    acc_ref[...] += jnp.dot(x_ref[...], w_ref[...],
                            preferred_element_type=jnp.float32)

    @pl.when(pl.program_id(2) == pl.num_programs(2) - 1)
    def _():
        y = acc_ref[...] + b_ref[...] + r_ref[...].astype(jnp.float32)
        o_ref[...] = _apply_act(y, act).astype(o_ref.dtype)


def _mm_head_kernel(x_ref, w_ref, b_ref, logit_ref, sig_ref, acc_ref):
    """Head matmul emitting both logits and sigmoid(logits)."""
    @pl.when(pl.program_id(2) == 0)
    def _():
        acc_ref[...] = jnp.zeros_like(acc_ref)

    acc_ref[...] += jnp.dot(x_ref[...], w_ref[...],
                            preferred_element_type=jnp.float32)

    @pl.when(pl.program_id(2) == pl.num_programs(2) - 1)
    def _():
        y = acc_ref[...] + b_ref[...]
        logit_ref[...] = y
        sig_ref[...] = 1.0 / (1.0 + jnp.exp(-y))


def _ln_kernel(x_ref, g_ref, b_ref, o_ref, *, eps):
    """Row-wise LayerNorm over the last dim, computed in f32."""
    x = x_ref[...].astype(jnp.float32)
    mean = jnp.mean(x, axis=-1, keepdims=True)
    xc = x - mean
    var = jnp.mean(xc * xc, axis=-1, keepdims=True)
    y = xc * jax.lax.rsqrt(var + eps) * g_ref[...] + b_ref[...]
    o_ref[...] = y.astype(o_ref.dtype)


def _add_pos_kernel(x_ref, p_ref, o_ref):
    """tokens += positional embedding (broadcast over batch via index_map)."""
    y = x_ref[...].astype(jnp.float32) + p_ref[...]
    o_ref[...] = y.astype(o_ref.dtype)


def _attn_kernel(q_ref, k_ref, v_ref, o_ref, *, scale, s_valid):
    """Softmax attention for one (batch, head): softmax(q k^T * scale) v."""
    q = q_ref[0]                       # (Sp, dh) bf16
    k = k_ref[0]
    v = v_ref[0]
    s = jax.lax.dot_general(q, k, (((1,), (1,)), ((), ())),
                            preferred_element_type=jnp.float32) * scale
    col = jax.lax.broadcasted_iota(jnp.int32, s.shape, 1)
    s = jnp.where(col < s_valid, s, -1e30)       # mask padded key columns
    m = jnp.max(s, axis=-1, keepdims=True)
    p = jnp.exp(s - m)
    denom = jnp.sum(p, axis=-1, keepdims=True)
    p = p * pl.reciprocal(denom, approx=True)
    o = jnp.dot(p.astype(v.dtype), v, preferred_element_type=jnp.float32)
    o_ref[0] = o.astype(o_ref.dtype)


# ----------------------------------------------------------------------------
# Pallas wrappers
# ----------------------------------------------------------------------------
def matmul_bias(x, w, bias, *, act="none", residual=None,
                out_dtype=jnp.bfloat16):
    """y = act(x @ w + bias [+ residual]) on the MXU (bf16 in, f32 acc)."""
    M, K = x.shape
    Kw, N = w.shape
    assert K == Kw
    TM = min(256, _round_up(M, 16))
    TK = min(256, _round_up(K, 128))
    TN = min(256, _round_up(N, 128))
    Mp, Kp, Np = _round_up(M, TM), _round_up(K, TK), _round_up(N, TN)

    xp = jnp.pad(x.astype(jnp.bfloat16), ((0, Mp - M), (0, Kp - K)))
    wp = jnp.pad(w.astype(jnp.bfloat16), ((0, Kp - K), (0, Np - N)))
    bp = jnp.pad(bias.astype(jnp.float32).reshape(1, N), ((0, 0), (0, Np - N)))

    in_specs = [
        pl.BlockSpec((TM, TK), lambda i, j, k: (i, k)),
        pl.BlockSpec((TK, TN), lambda i, j, k: (k, j)),
        pl.BlockSpec((1, TN), lambda i, j, k: (0, j)),
    ]
    args = [xp, wp, bp]
    out_bytes = jnp.dtype(out_dtype).itemsize
    bytes_accessed = 2 * Mp * Kp + 2 * Kp * Np + 4 * Np + out_bytes * Mp * Np
    if residual is not None:
        rp = jnp.pad(residual.astype(jnp.bfloat16), ((0, Mp - M), (0, Np - N)))
        in_specs.append(pl.BlockSpec((TM, TN), lambda i, j, k: (i, j)))
        args.append(rp)
        bytes_accessed += 2 * Mp * Np
        kernel = functools.partial(_mm_bias_res_kernel, act=act)
    else:
        kernel = functools.partial(_mm_bias_kernel, act=act)

    out = pl.pallas_call(
        kernel,
        out_shape=jax.ShapeDtypeStruct((Mp, Np), out_dtype),
        grid_spec=pltpu.PrefetchScalarGridSpec(
            num_scalar_prefetch=0,
            grid=(Mp // TM, Np // TN, Kp // TK),   # M leading, K (reduction) last
            in_specs=in_specs,
            out_specs=pl.BlockSpec((TM, TN), lambda i, j, k: (i, j)),
            scratch_shapes=[pltpu.VMEM((TM, TN), jnp.float32)]),
        compiler_params=pltpu.CompilerParams(
            dimension_semantics=("parallel", "parallel", "arbitrary"),
            vmem_limit_bytes=_VMEM_LIMIT),
        cost_estimate=pl.CostEstimate(
            flops=2 * Mp * Kp * Np,
            transcendentals=Mp * Np if act == "gelu" else 0,
            bytes_accessed=bytes_accessed),
    )(*args)
    return out[:M, :N]


def head_with_sigmoid(x, w, bias):
    """(logits, sigmoid(logits)) = x @ w + bias, both f32."""
    M, K = x.shape
    _, N = w.shape
    TM = min(256, _round_up(M, 16))
    TK = min(256, _round_up(K, 128))
    TN = min(256, _round_up(N, 128))
    Mp, Kp, Np = _round_up(M, TM), _round_up(K, TK), _round_up(N, TN)

    xp = jnp.pad(x.astype(jnp.bfloat16), ((0, Mp - M), (0, Kp - K)))
    wp = jnp.pad(w.astype(jnp.bfloat16), ((0, Kp - K), (0, Np - N)))
    bp = jnp.pad(bias.astype(jnp.float32).reshape(1, N), ((0, 0), (0, Np - N)))

    out_spec = pl.BlockSpec((TM, TN), lambda i, j, k: (i, j))
    logits, sig = pl.pallas_call(
        _mm_head_kernel,
        out_shape=(jax.ShapeDtypeStruct((Mp, Np), jnp.float32),
                   jax.ShapeDtypeStruct((Mp, Np), jnp.float32)),
        grid_spec=pltpu.PrefetchScalarGridSpec(
            num_scalar_prefetch=0,
            grid=(Mp // TM, Np // TN, Kp // TK),
            in_specs=[
                pl.BlockSpec((TM, TK), lambda i, j, k: (i, k)),
                pl.BlockSpec((TK, TN), lambda i, j, k: (k, j)),
                pl.BlockSpec((1, TN), lambda i, j, k: (0, j)),
            ],
            out_specs=[out_spec, out_spec],
            scratch_shapes=[pltpu.VMEM((TM, TN), jnp.float32)]),
        compiler_params=pltpu.CompilerParams(
            dimension_semantics=("parallel", "parallel", "arbitrary"),
            vmem_limit_bytes=_VMEM_LIMIT),
        cost_estimate=pl.CostEstimate(
            flops=2 * Mp * Kp * Np, transcendentals=Mp * Np,
            bytes_accessed=2 * Mp * Kp + 2 * Kp * Np + 4 * Np + 8 * Mp * Np),
    )(xp, wp, bp)
    return logits[:M, :N], sig[:M, :N]


def layer_norm(x, gamma, beta, eps=1e-6):
    """LayerNorm over rows of a (M, D) matrix, tiled over M."""
    M, D = x.shape
    TM = min(256, _round_up(M, 16))
    Mp = _round_up(M, TM)
    xp = jnp.pad(x, ((0, Mp - M), (0, 0)))
    g = gamma.astype(jnp.float32).reshape(1, D)
    b = beta.astype(jnp.float32).reshape(1, D)
    out = pl.pallas_call(
        functools.partial(_ln_kernel, eps=eps),
        out_shape=jax.ShapeDtypeStruct((Mp, D), x.dtype),
        grid_spec=pltpu.PrefetchScalarGridSpec(
            num_scalar_prefetch=0,
            grid=(Mp // TM,),
            in_specs=[pl.BlockSpec((TM, D), lambda i: (i, 0)),
                      pl.BlockSpec((1, D), lambda i: (0, 0)),
                      pl.BlockSpec((1, D), lambda i: (0, 0))],
            out_specs=pl.BlockSpec((TM, D), lambda i: (i, 0))),
        compiler_params=pltpu.CompilerParams(
            dimension_semantics=("parallel",),
            vmem_limit_bytes=_VMEM_LIMIT),
    )(xp, g, b)
    return out[:M]


def add_pos_embed(x, pos):
    """x: (N, S, D) tokens (bf16); pos: (1, S, D) f32. Gridded over batch."""
    N, S, D = x.shape
    return pl.pallas_call(
        _add_pos_kernel,
        out_shape=jax.ShapeDtypeStruct((N, S, D), x.dtype),
        grid_spec=pltpu.PrefetchScalarGridSpec(
            num_scalar_prefetch=0,
            grid=(N,),
            in_specs=[pl.BlockSpec((1, S, D), lambda n: (n, 0, 0)),
                      pl.BlockSpec((1, S, D), lambda n: (0, 0, 0))],
            out_specs=pl.BlockSpec((1, S, D), lambda n: (n, 0, 0))),
        compiler_params=pltpu.CompilerParams(
            dimension_semantics=("parallel",),
            vmem_limit_bytes=_VMEM_LIMIT),
    )(x, pos.astype(jnp.float32))


def attention(q, k, v, *, scale, s_valid):
    """q, k, v: (B*H, S, dh) bf16 -> (B*H, S, dh). One (batch, head) per step."""
    BH, S, dh = q.shape
    Sp = _round_up(S, 8)
    if Sp != S:
        pad = ((0, 0), (0, Sp - S), (0, 0))
        q, k, v = jnp.pad(q, pad), jnp.pad(k, pad), jnp.pad(v, pad)
    spec = pl.BlockSpec((1, Sp, dh), lambda i: (i, 0, 0))
    out = pl.pallas_call(
        functools.partial(_attn_kernel, scale=scale, s_valid=s_valid),
        out_shape=jax.ShapeDtypeStruct((BH, Sp, dh), q.dtype),
        grid_spec=pltpu.PrefetchScalarGridSpec(
            num_scalar_prefetch=0,
            grid=(BH,),
            in_specs=[spec, spec, spec],
            out_specs=spec),
        compiler_params=pltpu.CompilerParams(
            dimension_semantics=("parallel",),
            vmem_limit_bytes=_VMEM_LIMIT),
    )(q, k, v)
    return out[:, :S, :]


def patch_embed(x_nchw, w, b, patch):
    """Conv2d(k=stride=patch) as a matmul. w: torch layout (D, C, p, p)."""
    N, C, H, W = x_nchw.shape
    hp, wp_ = H // patch, W // patch
    x = x_nchw.reshape(N, C, hp, patch, wp_, patch)
    x = jnp.transpose(x, (0, 2, 4, 1, 3, 5)).reshape(N * hp * wp_,
                                                     C * patch * patch)
    wm = w.reshape(w.shape[0], -1).T            # (C*p*p, D)
    y = matmul_bias(x, wm, b)                    # (N*num_patches, D) bf16
    return y.reshape(N, hp * wp_, w.shape[0])


# ----------------------------------------------------------------------------
# ViT forward (returns (logits, sigmoid(logits)) like ViT_OD.forward)
# ----------------------------------------------------------------------------
def vit_forward(params, x_nchw, *, num_heads, patch):
    x_nchw = x_nchw.astype(jnp.float32)
    N = x_nchw.shape[0]
    tokens = patch_embed(x_nchw, params['patch_w'], params['patch_b'], patch)
    D = tokens.shape[-1]
    cls = jnp.broadcast_to(params['cls'].astype(jnp.bfloat16), (N, 1, D))
    x = jnp.concatenate([cls, tokens], axis=1)            # (N, S, D)
    x = add_pos_embed(x, params['pos'])
    S = x.shape[1]
    M = N * S
    dh = D // num_heads
    scale = float(dh) ** -0.5
    xf = x.reshape(M, D)

    for blk in params['blocks']:
        # --- multi-head self-attention ---
        h = layer_norm(xf, blk['ln1_g'], blk['ln1_b'])
        qkv = matmul_bias(h, blk['qkv_w'], blk['qkv_b'])
        qkv = qkv.reshape(N, S, 3, num_heads, dh)
        q = jnp.transpose(qkv[:, :, 0], (0, 2, 1, 3)).reshape(N * num_heads, S, dh)
        k = jnp.transpose(qkv[:, :, 1], (0, 2, 1, 3)).reshape(N * num_heads, S, dh)
        v = jnp.transpose(qkv[:, :, 2], (0, 2, 1, 3)).reshape(N * num_heads, S, dh)
        a = attention(q, k, v, scale=scale, s_valid=S)
        a = jnp.transpose(a.reshape(N, num_heads, S, dh),
                          (0, 2, 1, 3)).reshape(M, D)
        xf = matmul_bias(a, blk['proj_w'], blk['proj_b'], residual=xf)
        # --- MLP ---
        h = layer_norm(xf, blk['ln2_g'], blk['ln2_b'])
        h = matmul_bias(h, blk['fc1_w'], blk['fc1_b'], act="gelu")
        xf = matmul_bias(h, blk['fc2_w'], blk['fc2_b'], residual=xf)

    xf = layer_norm(xf, params['lnf_g'], params['lnf_b'])
    cls_tok = xf.reshape(N, S, D)[:, 0, :]                 # (N, D) pool='token'
    logits, sig = head_with_sigmoid(cls_tok, params['head_w'], params['head_b'])
    return logits, sig


# ----------------------------------------------------------------------------
# Deterministic synthetic parameters (layouts match timm ViT + replaced head)
# ----------------------------------------------------------------------------
def init_params(key, *, num_classes=7, dim=256, depth=4, num_heads=4,
                mlp_ratio=4, patch=16, in_chans=3, num_patches=4):
    keys = iter(jax.random.split(key, 16 + depth * 8))
    nk = lambda: next(keys)

    def dense(fan_in, fan_out, std=0.02):
        return std * jax.random.normal(nk(), (fan_in, fan_out), jnp.float32)

    p = {}
    p['patch_w'] = 0.02 * jax.random.normal(nk(), (dim, in_chans, patch, patch),
                                            jnp.float32)
    p['patch_b'] = jnp.zeros((dim,), jnp.float32)
    p['cls'] = 0.02 * jax.random.normal(nk(), (1, 1, dim), jnp.float32)
    p['pos'] = 0.02 * jax.random.normal(nk(), (1, num_patches + 1, dim),
                                        jnp.float32)
    blocks = []
    for _ in range(depth):
        blocks.append({
            'ln1_g': jnp.ones((dim,), jnp.float32),
            'ln1_b': jnp.zeros((dim,), jnp.float32),
            'qkv_w': dense(dim, 3 * dim),
            'qkv_b': jnp.zeros((3 * dim,), jnp.float32),
            'proj_w': dense(dim, dim),
            'proj_b': jnp.zeros((dim,), jnp.float32),
            'ln2_g': jnp.ones((dim,), jnp.float32),
            'ln2_b': jnp.zeros((dim,), jnp.float32),
            'fc1_w': dense(dim, mlp_ratio * dim),
            'fc1_b': jnp.zeros((mlp_ratio * dim,), jnp.float32),
            'fc2_w': dense(mlp_ratio * dim, dim),
            'fc2_b': jnp.zeros((dim,), jnp.float32),
        })
    p['blocks'] = blocks
    p['lnf_g'] = jnp.ones((dim,), jnp.float32)
    p['lnf_b'] = jnp.zeros((dim,), jnp.float32)

    # Replaced head: nn.Linear(dim, num_classes) with xavier_uniform_ weight.
    limit = float((6.0 / (dim + num_classes)) ** 0.5)
    p['head_w'] = jax.random.uniform(nk(), (dim, num_classes), jnp.float32,
                                     -limit, limit)
    bound = float(1.0 / (dim ** 0.5))
    p['head_b'] = jax.random.uniform(nk(), (num_classes,), jnp.float32,
                                     -bound, bound)
    return p


if __name__ == "__main__":
    key = jax.random.PRNGKey(0)
    kp, kx = jax.random.split(key)

    IMG, PATCH = 32, 16
    DIM, DEPTH, HEADS, MLP = 256, 4, 4, 4   # scaled-down vit_base config
    num_patches = (IMG // PATCH) ** 2

    params = init_params(kp, num_classes=7, dim=DIM, depth=DEPTH,
                         num_heads=HEADS, mlp_ratio=MLP, patch=PATCH,
                         in_chans=3, num_patches=num_patches)
    x = jax.random.normal(kx, (2, 3, IMG, IMG), jnp.float32)

    fwd = jax.jit(functools.partial(vit_forward, num_heads=HEADS, patch=PATCH))
    logits, sig = jax.block_until_ready(fwd(params, x))

    assert logits.shape == (2, 7), logits.shape
    assert sig.shape == (2, 7), sig.shape
    assert bool(jnp.all(jnp.isfinite(logits)))
    assert bool(jnp.all(jnp.isfinite(sig)))
    assert bool(jnp.all((sig >= 0.0) & (sig <= 1.0)))
    print("KERNEL_OK")
</pallas_src>

<mosaic_0001>
module attributes {stable_mosaic.version = 11 : i64} {
  func.func @_mm_bias_kernel(%arg0: i32, %arg1: i32, %arg2: i32, %arg3: memref<16x256xbf16, #tpu.memory_space<vmem>>, %arg4: memref<256x256xbf16, #tpu.memory_space<vmem>>, %arg5: memref<1x256xf32, #tpu.memory_space<vmem>>, %arg6: memref<16x256xbf16, #tpu.memory_space<vmem>>, %arg7: memref<16x256xf32, #tpu.memory_space<vmem>>) attributes {dimension_semantics = [#tpu.dimension_semantics<parallel>, #tpu.dimension_semantics<parallel>, #tpu.dimension_semantics<arbitrary>], iteration_bounds = array<i64: 1, 1, 3>, scalar_prefetch = 0 : i64, scratch_operands = 1 : i64, tpu.core_type = #tpu.core_type<tc>, window_params = [{transform_indices = @transform_0, window_bounds = array<i64: 16, 256>}, {transform_indices = @transform_1, window_bounds = array<i64: 256, 256>}, {transform_indices = @transform_2, window_bounds = array<i64: 1, 256>}, {transform_indices = @transform_3, window_bounds = array<i64: 16, 256>}]} {
    %c0_i32 = arith.constant 0 : i32
    %0 = arith.cmpi eq, %arg2, %c0_i32 : i32
    %1 = arith.extui %0 : i1 to i32
    %c0_i32_0 = arith.constant 0 : i32
    %2 = arith.cmpi ne, %1, %c0_i32_0 : i32
    scf.if %2 {
      %cst_9 = arith.constant 0.000000e+00 : f32
      %12 = vector.broadcast %cst_9 : f32 to vector<16x256xf32>
      %c0_10 = arith.constant 0 : index
      %c0_11 = arith.constant 0 : index
      %13 = vector.load %arg7[%c0_10, %c0_11] : memref<16x256xf32, #tpu.memory_space<vmem>>, vector<16x256xf32>
      tpu.vector_store %arg7[%c0_10, %c0_11], %12 {strides = array<i32>} : memref<16x256xf32, #tpu.memory_space<vmem>>, vector<16x256xf32>,
    } else {
    }
    %c0 = arith.constant 0 : index
    %c0_1 = arith.constant 0 : index
    %3 = vector.load %arg7[%c0, %c0_1] : memref<16x256xf32, #tpu.memory_space<vmem>>, vector<16x256xf32>
    %c0_2 = arith.constant 0 : index
    %c0_3 = arith.constant 0 : index
    %4 = vector.load %arg3[%c0_2, %c0_3] : memref<16x256xbf16, #tpu.memory_space<vmem>>, vector<16x256xbf16>
    %c0_4 = arith.constant 0 : index
    %c0_5 = arith.constant 0 : index
    %5 = vector.load %arg4[%c0_4, %c0_5] : memref<256x256xbf16, #tpu.memory_space<vmem>>, vector<256x256xbf16>
    %cst = arith.constant dense<0.000000e+00> : vector<16x256xf32>
    %6 = tpu.matmul %4, %5, %cst {dimension_numbers = #tpu.dot_dimension_numbers<[1], [0], [0], [1], [0, 0, 1, 1], [], []>} : vector<16x256xbf16>, vector<256x256xbf16>, vector<16x256xf32> -> vector<16x256xf32>
    %7 = arith.addf %3, %6 : vector<16x256xf32>
    %c0_6 = arith.constant 0 : index
    %c0_7 = arith.constant 0 : index
    %8 = vector.load %arg7[%c0_6, %c0_7] : memref<16x256xf32, #tpu.memory_space<vmem>>, vector<16x256xf32>
    tpu.vector_store %arg7[%c0_6, %c0_7], %7 {strides = array<i32>} : memref<16x256xf32, #tpu.memory_space<vmem>>, vector<16x256xf32>,
    %c2_i32 = arith.constant 2 : i32
    %9 = arith.cmpi eq, %arg2, %c2_i32 : i32
    %10 = arith.extui %9 : i1 to i32
    %c0_i32_8 = arith.constant 0 : i32
    %11 = arith.cmpi ne, %10, %c0_i32_8 : i32
    scf.if %11 {
      %c0_9 = arith.constant 0 : index
      %c0_10 = arith.constant 0 : index
      %12 = vector.load %arg7[%c0_9, %c0_10] : memref<16x256xf32, #tpu.memory_space<vmem>>, vector<16x256xf32>
      %c0_11 = arith.constant 0 : index
      %c0_12 = arith.constant 0 : index
      %13 = vector.load %arg5[%c0_11, %c0_12] : memref<1x256xf32, #tpu.memory_space<vmem>>, vector<1x256xf32>
      %14 = vector.broadcast %13 : vector<1x256xf32> to vector<16x256xf32>
      %15 = arith.addf %12, %14 : vector<16x256xf32>
      %16 = arith.truncf %15 : vector<16x256xf32> to vector<16x256xbf16>
      %c0_13 = arith.constant 0 : index
      %c0_14 = arith.constant 0 : index
      %17 = vector.load %arg6[%c0_13, %c0_14] : memref<16x256xbf16, #tpu.memory_space<vmem>>, vector<16x256xbf16>
      tpu.vector_store %arg6[%c0_13, %c0_14], %16 {strides = array<i32>} : memref<16x256xbf16, #tpu.memory_space<vmem>>, vector<16x256xbf16>,
    } else {
    }
    return
  }
  func.func @transform_0(%arg0: i32, %arg1: i32, %arg2: i32) -> (i32, i32) {
    %c0_i32 = arith.constant 0 : i32
    return %arg0, %arg2 : i32, i32
  }
  func.func @transform_1(%arg0: i32, %arg1: i32, %arg2: i32) -> (i32, i32) {
    %c0_i32 = arith.constant 0 : i32
    return %arg2, %arg1 : i32, i32
  }
  func.func @transform_2(%arg0: i32, %arg1: i32, %arg2: i32) -> (i32, i32) {
    %c0_i32 = arith.constant 0 : i32
    %c0_i32_0 = arith.constant 0 : i32
    return %c0_i32, %arg1 : i32, i32
  }
  func.func @transform_3(%arg0: i32, %arg1: i32, %arg2: i32) -> (i32, i32) {
    %c0_i32 = arith.constant 0 : i32
    return %arg0, %arg1 : i32, i32
  }
}

module attributes {stable_mosaic.version = 11 : i64} {
  func.func @_add_pos_kernel(%arg0: i32, %arg1: memref<1x5x256xbf16, #tpu.memory_space<vmem>>, %arg2: memref<1x5x256xf32, #tpu.memory_space<vmem>>, %arg3: memref<1x5x256xbf16, #tpu.memory_space<vmem>>) attributes {dimension_semantics = [#tpu.dimension_semantics<parallel>], iteration_bounds = array<i64: 2>, scalar_prefetch = 0 : i64, scratch_operands = 0 : i64, tpu.core_type = #tpu.core_type<tc>, window_params = [{transform_indices = @transform_0, window_bounds = array<i64: 1, 5, 256>}, {pipeline_mode = #tpu.pipeline_mode<synchronous>, transform_indices = @transform_1, window_bounds = array<i64: 1, 5, 256>}, {transform_indices = @transform_2, window_bounds = array<i64: 1, 5, 256>}]} {
    %c0 = arith.constant 0 : index
    %c0_0 = arith.constant 0 : index
    %c0_1 = arith.constant 0 : index
    %0 = vector.load %arg1[%c0, %c0_0, %c0_1] : memref<1x5x256xbf16, #tpu.memory_space<vmem>>, vector<1x5x256xbf16>
    %1 = arith.extf %0 : vector<1x5x256xbf16> to vector<1x5x256xf32>
    %c0_2 = arith.constant 0 : index
    %c0_3 = arith.constant 0 : index
    %c0_4 = arith.constant 0 : index
    %2 = vector.load %arg2[%c0_2, %c0_3, %c0_4] : memref<1x5x256xf32, #tpu.memory_space<vmem>>, vector<1x5x256xf32>
    %3 = arith.addf %1, %2 : vector<1x5x256xf32>
    %4 = arith.truncf %3 : vector<1x5x256xf32> to vector<1x5x256xbf16>
    %c0_5 = arith.constant 0 : index
    %c0_6 = arith.constant 0 : index
    %c0_7 = arith.constant 0 : index
    %5 = vector.load %arg3[%c0_5, %c0_6, %c0_7] : memref<1x5x256xbf16, #tpu.memory_space<vmem>>, vector<1x5x256xbf16>
    tpu.vector_store %arg3[%c0_5, %c0_6, %c0_7], %4 {strides = array<i32>} : memref<1x5x256xbf16, #tpu.memory_space<vmem>>, vector<1x5x256xbf16>,
    return
  }
  func.func @transform_0(%arg0: i32) -> (i32, i32, i32) {
    %c0_i32 = arith.constant 0 : i32
    %c0_i32_0 = arith.constant 0 : i32
    %c0_i32_1 = arith.constant 0 : i32
    return %arg0, %c0_i32, %c0_i32_0 : i32, i32, i32
  }
  func.func @transform_1(%arg0: i32) -> (i32, i32, i32) {
    %c0_i32 = arith.constant 0 : i32
    %c0_i32_0 = arith.constant 0 : i32
    %c0_i32_1 = arith.constant 0 : i32
    %c0_i32_2 = arith.constant 0 : i32
    return %c0_i32, %c0_i32_0, %c0_i32_1 : i32, i32, i32
  }
  func.func @transform_2(%arg0: i32) -> (i32, i32, i32) {
    %c0_i32 = arith.constant 0 : i32
    %c0_i32_0 = arith.constant 0 : i32
    %c0_i32_1 = arith.constant 0 : i32
    return %arg0, %c0_i32, %c0_i32_0 : i32, i32, i32
  }
}

module attributes {stable_mosaic.version = 11 : i64} {
  func.func @_ln_kernel(%arg0: i32, %arg1: memref<16x256xbf16, #tpu.memory_space<vmem>>, %arg2: memref<1x256xf32, #tpu.memory_space<vmem>>, %arg3: memref<1x256xf32, #tpu.memory_space<vmem>>, %arg4: memref<16x256xbf16, #tpu.memory_space<vmem>>) attributes {dimension_semantics = [#tpu.dimension_semantics<parallel>], iteration_bounds = array<i64: 1>, scalar_prefetch = 0 : i64, scratch_operands = 0 : i64, tpu.core_type = #tpu.core_type<tc>, window_params = [{transform_indices = @transform_0, window_bounds = array<i64: 16, 256>}, {pipeline_mode = #tpu.pipeline_mode<synchronous>, transform_indices = @transform_1, window_bounds = array<i64: 1, 256>}, {pipeline_mode = #tpu.pipeline_mode<synchronous>, transform_indices = @transform_2, window_bounds = array<i64: 1, 256>}, {transform_indices = @transform_3, window_bounds = array<i64: 16, 256>}]} {
    %c0 = arith.constant 0 : index
    %c0_0 = arith.constant 0 : index
    %0 = vector.load %arg1[%c0, %c0_0] : memref<16x256xbf16, #tpu.memory_space<vmem>>, vector<16x256xbf16>
    %1 = arith.extf %0 : vector<16x256xbf16> to vector<16x256xf32>
    %cst = arith.constant dense<0.000000e+00> : vector<16xf32>
    %2 = vector.multi_reduction <add>, %1, %cst [1] : vector<16x256xf32> to vector<16xf32>
    %3 = vector.shape_cast %2 : vector<16xf32> to vector<16x1xf32>
    %cst_1 = arith.constant 2.560000e+02 : f32
    %4 = vector.broadcast %cst_1 : f32 to vector<16x1xf32>
    %5 = arith.divf %3, %4 : vector<16x1xf32>
    %6 = vector.broadcast %5 : vector<16x1xf32> to vector<16x256xf32>
    %7 = arith.subf %1, %6 : vector<16x256xf32>
    %8 = arith.mulf %7, %7 : vector<16x256xf32>
    %cst_2 = arith.constant dense<0.000000e+00> : vector<16xf32>
    %9 = vector.multi_reduction <add>, %8, %cst_2 [1] : vector<16x256xf32> to vector<16xf32>
    %10 = vector.shape_cast %9 : vector<16xf32> to vector<16x1xf32>
    %cst_3 = arith.constant 2.560000e+02 : f32
    %11 = vector.broadcast %cst_3 : f32 to vector<16x1xf32>
    %12 = arith.divf %10, %11 : vector<16x1xf32>
    %cst_4 = arith.constant 9.99999997E-7 : f32
    %13 = vector.broadcast %cst_4 : f32 to vector<16x1xf32>
    %14 = arith.addf %12, %13 : vector<16x1xf32>
    %15 = math.rsqrt %14 : vector<16x1xf32>
    %16 = vector.broadcast %15 : vector<16x1xf32> to vector<16x256xf32>
    %17 = arith.mulf %7, %16 : vector<16x256xf32>
    %c0_5 = arith.constant 0 : index
    %c0_6 = arith.constant 0 : index
    %18 = vector.load %arg2[%c0_5, %c0_6] : memref<1x256xf32, #tpu.memory_space<vmem>>, vector<1x256xf32>
    %19 = vector.broadcast %18 : vector<1x256xf32> to vector<16x256xf32>
    %20 = arith.mulf %17, %19 : vector<16x256xf32>
    %c0_7 = arith.constant 0 : index
    %c0_8 = arith.constant 0 : index
    %21 = vector.load %arg3[%c0_7, %c0_8] : memref<1x256xf32, #tpu.memory_space<vmem>>, vector<1x256xf32>
    %22 = vector.broadcast %21 : vector<1x256xf32> to vector<16x256xf32>
    %23 = arith.addf %20, %22 : vector<16x256xf32>
    %24 = arith.truncf %23 : vector<16x256xf32> to vector<16x256xbf16>
    %c0_9 = arith.constant 0 : index
    %c0_10 = arith.constant 0 : index
    %25 = vector.load %arg4[%c0_9, %c0_10] : memref<16x256xbf16, #tpu.memory_space<vmem>>, vector<16x256xbf16>
    tpu.vector_store %arg4[%c0_9, %c0_10], %24 {strides = array<i32>} : memref<16x256xbf16, #tpu.memory_space<vmem>>, vector<16x256xbf16>,
    return
  }
  func.func @transform_0(%arg0: i32) -> (i32, i32) {
    %c0_i32 = arith.constant 0 : i32
    %c0_i32_0 = arith.constant 0 : i32
    return %arg0, %c0_i32 : i32, i32
  }
  func.func @transform_1(%arg0: i32) -> (i32, i32) {
    %c0_i32 = arith.constant 0 : i32
    %c0_i32_0 = arith.constant 0 : i32
    %c0_i32_1 = arith.constant 0 : i32
    return %c0_i32, %c0_i32_0 : i32, i32
  }
  func.func @transform_2(%arg0: i32) -> (i32, i32) {
    %c0_i32 = arith.constant 0 : i32
    %c0_i32_0 = arith.constant 0 : i32
    %c0_i32_1 = arith.constant 0 : i32
    return %c0_i32, %c0_i32_0 : i32, i32
  }
  func.func @transform_3(%arg0: i32) -> (i32, i32) {
    %c0_i32 = arith.constant 0 : i32
    %c0_i32_0 = arith.constant 0 : i32
    return %arg0, %c0_i32 : i32, i32
  }
}

module attributes {stable_mosaic.version = 11 : i64} {
  func.func @_mm_bias_kernel(%arg0: i32, %arg1: i32, %arg2: i32, %arg3: memref<16x256xbf16, #tpu.memory_space<vmem>>, %arg4: memref<256x256xbf16, #tpu.memory_space<vmem>>, %arg5: memref<1x256xf32, #tpu.memory_space<vmem>>, %arg6: memref<16x256xbf16, #tpu.memory_space<vmem>>, %arg7: memref<16x256xf32, #tpu.memory_space<vmem>>) attributes {dimension_semantics = [#tpu.dimension_semantics<parallel>, #tpu.dimension_semantics<parallel>, #tpu.dimension_semantics<arbitrary>], iteration_bounds = array<i64: 1, 3, 1>, scalar_prefetch = 0 : i64, scratch_operands = 1 : i64, tpu.core_type = #tpu.core_type<tc>, window_params = [{transform_indices = @transform_0, window_bounds = array<i64: 16, 256>}, {transform_indices = @transform_1, window_bounds = array<i64: 256, 256>}, {transform_indices = @transform_2, window_bounds = array<i64: 1, 256>}, {transform_indices = @transform_3, window_bounds = array<i64: 16, 256>}]} {
    %c0_i32 = arith.constant 0 : i32
    %0 = arith.cmpi eq, %arg2, %c0_i32 : i32
    %1 = arith.extui %0 : i1 to i32
    %c0_i32_0 = arith.constant 0 : i32
    %2 = arith.cmpi ne, %1, %c0_i32_0 : i32
    scf.if %2 {
      %cst_10 = arith.constant 0.000000e+00 : f32
      %12 = vector.broadcast %cst_10 : f32 to vector<16x256xf32>
      %c0_11 = arith.constant 0 : index
      %c0_12 = arith.constant 0 : index
      %13 = vector.load %arg7[%c0_11, %c0_12] : memref<16x256xf32, #tpu.memory_space<vmem>>, vector<16x256xf32>
      tpu.vector_store %arg7[%c0_11, %c0_12], %12 {strides = array<i32>} : memref<16x256xf32, #tpu.memory_space<vmem>>, vector<16x256xf32>,
    } else {
    }
    %c0 = arith.constant 0 : index
    %c0_1 = arith.constant 0 : index
    %3 = vector.load %arg7[%c0, %c0_1] : memref<16x256xf32, #tpu.memory_space<vmem>>, vector<16x256xf32>
    %c0_2 = arith.constant 0 : index
    %c0_3 = arith.constant 0 : index
    %4 = vector.load %arg3[%c0_2, %c0_3] : memref<16x256xbf16, #tpu.memory_space<vmem>>, vector<16x256xbf16>
    %c0_4 = arith.constant 0 : index
    %c0_5 = arith.constant 0 : index
    %5 = vector.load %arg4[%c0_4, %c0_5] : memref<256x256xbf16, #tpu.memory_space<vmem>>, vector<256x256xbf16>
    %cst = arith.constant dense<0.000000e+00> : vector<16x256xf32>
    %6 = tpu.matmul %4, %5, %cst {dimension_numbers = #tpu.dot_dimension_numbers<[1], [0], [0], [1], [0, 0, 1, 1], [], []>} : vector<16x256xbf16>, vector<256x256xbf16>, vector<16x256xf32> -> vector<16x256xf32>
    %7 = arith.addf %3, %6 : vector<16x256xf32>
    %c0_6 = arith.constant 0 : index
    %c0_7 = arith.constant 0 : index
    %8 = vector.load %arg7[%c0_6, %c0_7] : memref<16x256xf32, #tpu.memory_space<vmem>>, vector<16x256xf32>
    tpu.vector_store %arg7[%c0_6, %c0_7], %7 {strides = array<i32>} : memref<16x256xf32, #tpu.memory_space<vmem>>, vector<16x256xf32>,
    %c0_i32_8 = arith.constant 0 : i32
    %9 = arith.cmpi eq, %arg2, %c0_i32_8 : i32
    %10 = arith.extui %9 : i1 to i32
    %c0_i32_9 = arith.constant 0 : i32
    %11 = arith.cmpi ne, %10, %c0_i32_9 : i32
    scf.if %11 {
      %c0_10 = arith.constant 0 : index
      %c0_11 = arith.constant 0 : index
      %12 = vector.load %arg7[%c0_10, %c0_11] : memref<16x256xf32, #tpu.memory_space<vmem>>, vector<16x256xf32>
      %c0_12 = arith.constant 0 : index
      %c0_13 = arith.constant 0 : index
      %13 = vector.load %arg5[%c0_12, %c0_13] : memref<1x256xf32, #tpu.memory_space<vmem>>, vector<1x256xf32>
      %14 = vector.broadcast %13 : vector<1x256xf32> to vector<16x256xf32>
      %15 = arith.addf %12, %14 : vector<16x256xf32>
      %16 = arith.truncf %15 : vector<16x256xf32> to vector<16x256xbf16>
      %c0_14 = arith.constant 0 : index
      %c0_15 = arith.constant 0 : index
      %17 = vector.load %arg6[%c0_14, %c0_15] : memref<16x256xbf16, #tpu.memory_space<vmem>>, vector<16x256xbf16>
      tpu.vector_store %arg6[%c0_14, %c0_15], %16 {strides = array<i32>} : memref<16x256xbf16, #tpu.memory_space<vmem>>, vector<16x256xbf16>,
    } else {
    }
    return
  }
  func.func @transform_0(%arg0: i32, %arg1: i32, %arg2: i32) -> (i32, i32) {
    %c0_i32 = arith.constant 0 : i32
    return %arg0, %arg2 : i32, i32
  }
  func.func @transform_1(%arg0: i32, %arg1: i32, %arg2: i32) -> (i32, i32) {
    %c0_i32 = arith.constant 0 : i32
    return %arg2, %arg1 : i32, i32
  }
  func.func @transform_2(%arg0: i32, %arg1: i32, %arg2: i32) -> (i32, i32) {
    %c0_i32 = arith.constant 0 : i32
    %c0_i32_0 = arith.constant 0 : i32
    return %c0_i32, %arg1 : i32, i32
  }
  func.func @transform_3(%arg0: i32, %arg1: i32, %arg2: i32) -> (i32, i32) {
    %c0_i32 = arith.constant 0 : i32
    return %arg0, %arg1 : i32, i32
  }
}

module attributes {stable_mosaic.version = 11 : i64} {
  func.func @_attn_kernel(%arg0: i32, %arg1: memref<1x8x64xbf16, #tpu.memory_space<vmem>>, %arg2: memref<1x8x64xbf16, #tpu.memory_space<vmem>>, %arg3: memref<1x8x64xbf16, #tpu.memory_space<vmem>>, %arg4: memref<1x8x64xbf16, #tpu.memory_space<vmem>>) attributes {dimension_semantics = [#tpu.dimension_semantics<parallel>], iteration_bounds = array<i64: 8>, scalar_prefetch = 0 : i64, scratch_operands = 0 : i64, tpu.core_type = #tpu.core_type<tc>, window_params = [{transform_indices = @transform_0, window_bounds = array<i64: 1, 8, 64>}, {transform_indices = @transform_1, window_bounds = array<i64: 1, 8, 64>}, {transform_indices = @transform_2, window_bounds = array<i64: 1, 8, 64>}, {transform_indices = @transform_3, window_bounds = array<i64: 1, 8, 64>}]} {
    %c0 = arith.constant 0 : index
    %c0_0 = arith.constant 0 : index
    %c0_1 = arith.constant 0 : index
    %0 = vector.load %arg1[%c0, %c0_0, %c0_1] : memref<1x8x64xbf16, #tpu.memory_space<vmem>>, vector<1x8x64xbf16>
    %1 = vector.shape_cast %0 : vector<1x8x64xbf16> to vector<8x64xbf16>
    %c0_2 = arith.constant 0 : index
    %c0_3 = arith.constant 0 : index
    %c0_4 = arith.constant 0 : index
    %2 = vector.load %arg2[%c0_2, %c0_3, %c0_4] : memref<1x8x64xbf16, #tpu.memory_space<vmem>>, vector<1x8x64xbf16>
    %3 = vector.shape_cast %2 : vector<1x8x64xbf16> to vector<8x64xbf16>
    %c0_5 = arith.constant 0 : index
    %c0_6 = arith.constant 0 : index
    %c0_7 = arith.constant 0 : index
    %4 = vector.load %arg3[%c0_5, %c0_6, %c0_7] : memref<1x8x64xbf16, #tpu.memory_space<vmem>>, vector<1x8x64xbf16>
    %5 = vector.shape_cast %4 : vector<1x8x64xbf16> to vector<8x64xbf16>
    %cst = arith.constant dense<0.000000e+00> : vector<8x8xf32>
    %6 = tpu.matmul %1, %3, %cst {dimension_numbers = #tpu.dot_dimension_numbers<[1], [1], [0], [0], [0, 0, 1, 0], [], []>} : vector<8x64xbf16>, vector<8x64xbf16>, vector<8x8xf32> -> vector<8x8xf32>
    %cst_8 = arith.constant 1.250000e-01 : f32
    %7 = vector.broadcast %cst_8 : f32 to vector<8x8xf32>
    %8 = arith.mulf %6, %7 : vector<8x8xf32>
    %9 = tpu.iota {dimensions = array<i32: 1>} : vector<8x8xi32>
    %c5_i32 = arith.constant 5 : i32
    %10 = vector.broadcast %c5_i32 : i32 to vector<8x8xi32>
    %11 = arith.cmpi slt, %9, %10 : vector<8x8xi32>
    %cst_9 = arith.constant -1.000000e+30 : f32
    %12 = vector.broadcast %cst_9 : f32 to vector<8x8xf32>
    %13 = arith.select %11, %8, %12 : vector<8x8xi1>, vector<8x8xf32>
    %cst_10 = arith.constant dense<0xFF800000> : vector<8xf32>
    %14 = vector.multi_reduction <maximumf>, %13, %cst_10 [1] : vector<8x8xf32> to vector<8xf32>
    %15 = vector.shape_cast %14 : vector<8xf32> to vector<8x1xf32>
    %16 = vector.broadcast %15 : vector<8x1xf32> to vector<8x8xf32>
    %17 = arith.subf %13, %16 : vector<8x8xf32>
    %18 = math.exp %17 : vector<8x8xf32>
    %cst_11 = arith.constant dense<0.000000e+00> : vector<8xf32>
    %19 = vector.multi_reduction <add>, %18, %cst_11 [1] : vector<8x8xf32> to vector<8xf32>
    %20 = vector.shape_cast %19 : vector<8xf32> to vector<8x1xf32>
    %21 = tpu.reciprocal %20 {approx = true} : vector<8x1xf32> -> vector<8x1xf32>
    %22 = vector.broadcast %21 : vector<8x1xf32> to vector<8x8xf32>
    %23 = arith.mulf %18, %22 : vector<8x8xf32>
    %24 = arith.truncf %23 : vector<8x8xf32> to vector<8x8xbf16>
    %cst_12 = arith.constant dense<0.000000e+00> : vector<8x64xf32>
    %25 = tpu.matmul %24, %5, %cst_12 {dimension_numbers = #tpu.dot_dimension_numbers<[1], [0], [0], [1], [0, 0, 1, 1], [], []>} : vector<8x8xbf16>, vector<8x64xbf16>, vector<8x64xf32> -> vector<8x64xf32>
    %26 = arith.truncf %25 : vector<8x64xf32> to vector<8x64xbf16>
    %c0_13 = arith.constant 0 : index
    %c0_14 = arith.constant 0 : index
    %c0_15 = arith.constant 0 : index
    %27 = vector.load %arg4[%c0_13, %c0_14, %c0_15] : memref<1x8x64xbf16, #tpu.memory_space<vmem>>, vector<1x8x64xbf16>
    %28 = vector.shape_cast %27 : vector<1x8x64xbf16> to vector<8x64xbf16>
    %29 = vector.shape_cast %26 : vector<8x64xbf16> to vector<1x8x64xbf16>
    tpu.vector_store %arg4[%c0_13, %c0_14, %c0_15], %29 {strides = array<i32>} : memref<1x8x64xbf16, #tpu.memory_space<vmem>>, vector<1x8x64xbf16>,
    return
  }
  func.func @transform_0(%arg0: i32) -> (i32, i32, i32) {
    %c0_i32 = arith.constant 0 : i32
    %c0_i32_0 = arith.constant 0 : i32
    %c0_i32_1 = arith.constant 0 : i32
    return %arg0, %c0_i32, %c0_i32_0 : i32, i32, i32
  }
  func.func @transform_1(%arg0: i32) -> (i32, i32, i32) {
    %c0_i32 = arith.constant 0 : i32
    %c0_i32_0 = arith.constant 0 : i32
    %c0_i32_1 = arith.constant 0 : i32
    return %arg0, %c0_i32, %c0_i32_0 : i32, i32, i32
  }
  func.func @transform_2(%arg0: i32) -> (i32, i32, i32) {
    %c0_i32 = arith.constant 0 : i32
    %c0_i32_0 = arith.constant 0 : i32
    %c0_i32_1 = arith.constant 0 : i32
    return %arg0, %c0_i32, %c0_i32_0 : i32, i32, i32
  }
  func.func @transform_3(%arg0: i32) -> (i32, i32, i32) {
    %c0_i32 = arith.constant 0 : i32
    %c0_i32_0 = arith.constant 0 : i32
    %c0_i32_1 = arith.constant 0 : i32
    return %arg0, %c0_i32, %c0_i32_0 : i32, i32, i32
  }
}

module attributes {stable_mosaic.version = 11 : i64} {
  func.func @_mm_bias_res_kernel(%arg0: i32, %arg1: i32, %arg2: i32, %arg3: memref<16x256xbf16, #tpu.memory_space<vmem>>, %arg4: memref<256x256xbf16, #tpu.memory_space<vmem>>, %arg5: memref<1x256xf32, #tpu.memory_space<vmem>>, %arg6: memref<16x256xbf16, #tpu.memory_space<vmem>>, %arg7: memref<16x256xbf16, #tpu.memory_space<vmem>>, %arg8: memref<16x256xf32, #tpu.memory_space<vmem>>) attributes {dimension_semantics = [#tpu.dimension_semantics<parallel>, #tpu.dimension_semantics<parallel>, #tpu.dimension_semantics<arbitrary>], iteration_bounds = array<i64: 1, 1, 1>, scalar_prefetch = 0 : i64, scratch_operands = 1 : i64, tpu.core_type = #tpu.core_type<tc>, window_params = [{transform_indices = @transform_0, window_bounds = array<i64: 16, 256>}, {transform_indices = @transform_1, window_bounds = array<i64: 256, 256>}, {transform_indices = @transform_2, window_bounds = array<i64: 1, 256>}, {transform_indices = @transform_3, window_bounds = array<i64: 16, 256>}, {transform_indices = @transform_4, window_bounds = array<i64: 16, 256>}]} {
    %c0_i32 = arith.constant 0 : i32
    %0 = arith.cmpi eq, %arg2, %c0_i32 : i32
    %1 = arith.extui %0 : i1 to i32
    %c0_i32_0 = arith.constant 0 : i32
    %2 = arith.cmpi ne, %1, %c0_i32_0 : i32
    scf.if %2 {
      %cst_10 = arith.constant 0.000000e+00 : f32
      %12 = vector.broadcast %cst_10 : f32 to vector<16x256xf32>
      %c0_11 = arith.constant 0 : index
      %c0_12 = arith.constant 0 : index
      %13 = vector.load %arg8[%c0_11, %c0_12] : memref<16x256xf32, #tpu.memory_space<vmem>>, vector<16x256xf32>
      tpu.vector_store %arg8[%c0_11, %c0_12], %12 {strides = array<i32>} : memref<16x256xf32, #tpu.memory_space<vmem>>, vector<16x256xf32>,
    } else {
    }
    %c0 = arith.constant 0 : index
    %c0_1 = arith.constant 0 : index
    %3 = vector.load %arg8[%c0, %c0_1] : memref<16x256xf32, #tpu.memory_space<vmem>>, vector<16x256xf32>
    %c0_2 = arith.constant 0 : index
    %c0_3 = arith.constant 0 : index
    %4 = vector.load %arg3[%c0_2, %c0_3] : memref<16x256xbf16, #tpu.memory_space<vmem>>, vector<16x256xbf16>
    %c0_4 = arith.constant 0 : index
    %c0_5 = arith.constant 0 : index
    %5 = vector.load %arg4[%c0_4, %c0_5] : memref<256x256xbf16, #tpu.memory_space<vmem>>, vector<256x256xbf16>
    %cst = arith.constant dense<0.000000e+00> : vector<16x256xf32>
    %6 = tpu.matmul %4, %5, %cst {dimension_numbers = #tpu.dot_dimension_numbers<[1], [0], [0], [1], [0, 0, 1, 1], [], []>} : vector<16x256xbf16>, vector<256x256xbf16>, vector<16x256xf32> -> vector<16x256xf32>
    %7 = arith.addf %3, %6 : vector<16x256xf32>
    %c0_6 = arith.constant 0 : index
    %c0_7 = arith.constant 0 : index
    %8 = vector.load %arg8[%c0_6, %c0_7] : memref<16x256xf32, #tpu.memory_space<vmem>>, vector<16x256xf32>
    tpu.vector_store %arg8[%c0_6, %c0_7], %7 {strides = array<i32>} : memref<16x256xf32, #tpu.memory_space<vmem>>, vector<16x256xf32>,
    %c0_i32_8 = arith.constant 0 : i32
    %9 = arith.cmpi eq, %arg2, %c0_i32_8 : i32
    %10 = arith.extui %9 : i1 to i32
    %c0_i32_9 = arith.constant 0 : i32
    %11 = arith.cmpi ne, %10, %c0_i32_9 : i32
    scf.if %11 {
      %c0_10 = arith.constant 0 : index
      %c0_11 = arith.constant 0 : index
      %12 = vector.load %arg8[%c0_10, %c0_11] : memref<16x256xf32, #tpu.memory_space<vmem>>, vector<16x256xf32>
      %c0_12 = arith.constant 0 : index
      %c0_13 = arith.constant 0 : index
      %13 = vector.load %arg5[%c0_12, %c0_13] : memref<1x256xf32, #tpu.memory_space<vmem>>, vector<1x256xf32>
      %14 = vector.broadcast %13 : vector<1x256xf32> to vector<16x256xf32>
      %15 = arith.addf %12, %14 : vector<16x256xf32>
      %c0_14 = arith.constant 0 : index
      %c0_15 = arith.constant 0 : index
      %16 = vector.load %arg6[%c0_14, %c0_15] : memref<16x256xbf16, #tpu.memory_space<vmem>>, vector<16x256xbf16>
      %17 = arith.extf %16 : vector<16x256xbf16> to vector<16x256xf32>
      %18 = arith.addf %15, %17 : vector<16x256xf32>
      %19 = arith.truncf %18 : vector<16x256xf32> to vector<16x256xbf16>
      %c0_16 = arith.constant 0 : index
      %c0_17 = arith.constant 0 : index
      %20 = vector.load %arg7[%c0_16, %c0_17] : memref<16x256xbf16, #tpu.memory_space<vmem>>, vector<16x256xbf16>
      tpu.vector_store %arg7[%c0_16, %c0_17], %19 {strides = array<i32>} : memref<16x256xbf16, #tpu.memory_space<vmem>>, vector<16x256xbf16>,
    } else {
    }
    return
  }
  func.func @transform_0(%arg0: i32, %arg1: i32, %arg2: i32) -> (i32, i32) {
    %c0_i32 = arith.constant 0 : i32
    return %arg0, %arg2 : i32, i32
  }
  func.func @transform_1(%arg0: i32, %arg1: i32, %arg2: i32) -> (i32, i32) {
    %c0_i32 = arith.constant 0 : i32
    return %arg2, %arg1 : i32, i32
  }
  func.func @transform_2(%arg0: i32, %arg1: i32, %arg2: i32) -> (i32, i32) {
    %c0_i32 = arith.constant 0 : i32
    %c0_i32_0 = arith.constant 0 : i32
    return %c0_i32, %arg1 : i32, i32
  }
  func.func @transform_3(%arg0: i32, %arg1: i32, %arg2: i32) -> (i32, i32) {
    %c0_i32 = arith.constant 0 : i32
    return %arg0, %arg1 : i32, i32
  }
  func.func @transform_4(%arg0: i32, %arg1: i32, %arg2: i32) -> (i32, i32) {
    %c0_i32 = arith.constant 0 : i32
    return %arg0, %arg1 : i32, i32
  }
}

module attributes {stable_mosaic.version = 11 : i64} {
  func.func @_mm_bias_kernel(%arg0: i32, %arg1: i32, %arg2: i32, %arg3: memref<16x256xbf16, #tpu.memory_space<vmem>>, %arg4: memref<256x256xbf16, #tpu.memory_space<vmem>>, %arg5: memref<1x256xf32, #tpu.memory_space<vmem>>, %arg6: memref<16x256xbf16, #tpu.memory_space<vmem>>, %arg7: memref<16x256xf32, #tpu.memory_space<vmem>>) attributes {dimension_semantics = [#tpu.dimension_semantics<parallel>, #tpu.dimension_semantics<parallel>, #tpu.dimension_semantics<arbitrary>], iteration_bounds = array<i64: 1, 4, 1>, scalar_prefetch = 0 : i64, scratch_operands = 1 : i64, tpu.core_type = #tpu.core_type<tc>, window_params = [{transform_indices = @transform_0, window_bounds = array<i64: 16, 256>}, {transform_indices = @transform_1, window_bounds = array<i64: 256, 256>}, {transform_indices = @transform_2, window_bounds = array<i64: 1, 256>}, {transform_indices = @transform_3, window_bounds = array<i64: 16, 256>}]} {
    %c0_i32 = arith.constant 0 : i32
    %0 = arith.cmpi eq, %arg2, %c0_i32 : i32
    %1 = arith.extui %0 : i1 to i32
    %c0_i32_0 = arith.constant 0 : i32
    %2 = arith.cmpi ne, %1, %c0_i32_0 : i32
    scf.if %2 {
      %cst_10 = arith.constant 0.000000e+00 : f32
      %12 = vector.broadcast %cst_10 : f32 to vector<16x256xf32>
      %c0_11 = arith.constant 0 : index
      %c0_12 = arith.constant 0 : index
      %13 = vector.load %arg7[%c0_11, %c0_12] : memref<16x256xf32, #tpu.memory_space<vmem>>, vector<16x256xf32>
      tpu.vector_store %arg7[%c0_11, %c0_12], %12 {strides = array<i32>} : memref<16x256xf32, #tpu.memory_space<vmem>>, vector<16x256xf32>,
    } else {
    }
    %c0 = arith.constant 0 : index
    %c0_1 = arith.constant 0 : index
    %3 = vector.load %arg7[%c0, %c0_1] : memref<16x256xf32, #tpu.memory_space<vmem>>, vector<16x256xf32>
    %c0_2 = arith.constant 0 : index
    %c0_3 = arith.constant 0 : index
    %4 = vector.load %arg3[%c0_2, %c0_3] : memref<16x256xbf16, #tpu.memory_space<vmem>>, vector<16x256xbf16>
    %c0_4 = arith.constant 0 : index
    %c0_5 = arith.constant 0 : index
    %5 = vector.load %arg4[%c0_4, %c0_5] : memref<256x256xbf16, #tpu.memory_space<vmem>>, vector<256x256xbf16>
    %cst = arith.constant dense<0.000000e+00> : vector<16x256xf32>
    %6 = tpu.matmul %4, %5, %cst {dimension_numbers = #tpu.dot_dimension_numbers<[1], [0], [0], [1], [0, 0, 1, 1], [], []>} : vector<16x256xbf16>, vector<256x256xbf16>, vector<16x256xf32> -> vector<16x256xf32>
    %7 = arith.addf %3, %6 : vector<16x256xf32>
    %c0_6 = arith.constant 0 : index
    %c0_7 = arith.constant 0 : index
    %8 = vector.load %arg7[%c0_6, %c0_7] : memref<16x256xf32, #tpu.memory_space<vmem>>, vector<16x256xf32>
    tpu.vector_store %arg7[%c0_6, %c0_7], %7 {strides = array<i32>} : memref<16x256xf32, #tpu.memory_space<vmem>>, vector<16x256xf32>,
    %c0_i32_8 = arith.constant 0 : i32
    %9 = arith.cmpi eq, %arg2, %c0_i32_8 : i32
    %10 = arith.extui %9 : i1 to i32
    %c0_i32_9 = arith.constant 0 : i32
    %11 = arith.cmpi ne, %10, %c0_i32_9 : i32
    scf.if %11 {
      %c0_10 = arith.constant 0 : index
      %c0_11 = arith.constant 0 : index
      %12 = vector.load %arg7[%c0_10, %c0_11] : memref<16x256xf32, #tpu.memory_space<vmem>>, vector<16x256xf32>
      %c0_12 = arith.constant 0 : index
      %c0_13 = arith.constant 0 : index
      %13 = vector.load %arg5[%c0_12, %c0_13] : memref<1x256xf32, #tpu.memory_space<vmem>>, vector<1x256xf32>
      %14 = vector.broadcast %13 : vector<1x256xf32> to vector<16x256xf32>
      %15 = arith.addf %12, %14 : vector<16x256xf32>
      %cst_14 = arith.constant 5.000000e-01 : f32
      %16 = vector.broadcast %cst_14 : f32 to vector<16x256xf32>
      %17 = arith.mulf %16, %15 : vector<16x256xf32>
      %cst_15 = arith.constant 4.471500e-02 : f32
      %18 = vector.broadcast %cst_15 : f32 to vector<16x256xf32>
      %19 = arith.mulf %18, %15 : vector<16x256xf32>
      %20 = arith.mulf %19, %15 : vector<16x256xf32>
      %21 = arith.mulf %20, %15 : vector<16x256xf32>
      %22 = arith.addf %15, %21 : vector<16x256xf32>
      %cst_16 = arith.constant 0.797884583 : f32
      %23 = vector.broadcast %cst_16 : f32 to vector<16x256xf32>
      %24 = arith.mulf %23, %22 : vector<16x256xf32>
      %25 = math.tanh %24 : vector<16x256xf32>
      %cst_17 = arith.constant 1.000000e+00 : f32
      %26 = vector.broadcast %cst_17 : f32 to vector<16x256xf32>
      %27 = arith.addf %26, %25 : vector<16x256xf32>
      %28 = arith.mulf %17, %27 : vector<16x256xf32>
      %29 = arith.truncf %28 : vector<16x256xf32> to vector<16x256xbf16>
      %c0_18 = arith.constant 0 : index
      %c0_19 = arith.constant 0 : index
      %30 = vector.load %arg6[%c0_18, %c0_19] : memref<16x256xbf16, #tpu.memory_space<vmem>>, vector<16x256xbf16>
      tpu.vector_store %arg6[%c0_18, %c0_19], %29 {strides = array<i32>} : memref<16x256xbf16, #tpu.memory_space<vmem>>, vector<16x256xbf16>,
    } else {
    }
    return
  }
  func.func @transform_0(%arg0: i32, %arg1: i32, %arg2: i32) -> (i32, i32) {
    %c0_i32 = arith.constant 0 : i32
    return %arg0, %arg2 : i32, i32
  }
  func.func @transform_1(%arg0: i32, %arg1: i32, %arg2: i32) -> (i32, i32) {
    %c0_i32 = arith.constant 0 : i32
    return %arg2, %arg1 : i32, i32
  }
  func.func @transform_2(%arg0: i32, %arg1: i32, %arg2: i32) -> (i32, i32) {
    %c0_i32 = arith.constant 0 : i32
    %c0_i32_0 = arith.constant 0 : i32
    return %c0_i32, %arg1 : i32, i32
  }
  func.func @transform_3(%arg0: i32, %arg1: i32, %arg2: i32) -> (i32, i32) {
    %c0_i32 = arith.constant 0 : i32
    return %arg0, %arg1 : i32, i32
  }
}

module attributes {stable_mosaic.version = 11 : i64} {
  func.func @_mm_bias_res_kernel(%arg0: i32, %arg1: i32, %arg2: i32, %arg3: memref<16x256xbf16, #tpu.memory_space<vmem>>, %arg4: memref<256x256xbf16, #tpu.memory_space<vmem>>, %arg5: memref<1x256xf32, #tpu.memory_space<vmem>>, %arg6: memref<16x256xbf16, #tpu.memory_space<vmem>>, %arg7: memref<16x256xbf16, #tpu.memory_space<vmem>>, %arg8: memref<16x256xf32, #tpu.memory_space<vmem>>) attributes {dimension_semantics = [#tpu.dimension_semantics<parallel>, #tpu.dimension_semantics<parallel>, #tpu.dimension_semantics<arbitrary>], iteration_bounds = array<i64: 1, 1, 4>, scalar_prefetch = 0 : i64, scratch_operands = 1 : i64, tpu.core_type = #tpu.core_type<tc>, window_params = [{transform_indices = @transform_0, window_bounds = array<i64: 16, 256>}, {transform_indices = @transform_1, window_bounds = array<i64: 256, 256>}, {transform_indices = @transform_2, window_bounds = array<i64: 1, 256>}, {transform_indices = @transform_3, window_bounds = array<i64: 16, 256>}, {transform_indices = @transform_4, window_bounds = array<i64: 16, 256>}]} {
    %c0_i32 = arith.constant 0 : i32
    %0 = arith.cmpi eq, %arg2, %c0_i32 : i32
    %1 = arith.extui %0 : i1 to i32
    %c0_i32_0 = arith.constant 0 : i32
    %2 = arith.cmpi ne, %1, %c0_i32_0 : i32
    scf.if %2 {
      %cst_9 = arith.constant 0.000000e+00 : f32
      %12 = vector.broadcast %cst_9 : f32 to vector<16x256xf32>
      %c0_10 = arith.constant 0 : index
      %c0_11 = arith.constant 0 : index
      %13 = vector.load %arg8[%c0_10, %c0_11] : memref<16x256xf32, #tpu.memory_space<vmem>>, vector<16x256xf32>
      tpu.vector_store %arg8[%c0_10, %c0_11], %12 {strides = array<i32>} : memref<16x256xf32, #tpu.memory_space<vmem>>, vector<16x256xf32>,
    } else {
    }
    %c0 = arith.constant 0 : index
    %c0_1 = arith.constant 0 : index
    %3 = vector.load %arg8[%c0, %c0_1] : memref<16x256xf32, #tpu.memory_space<vmem>>, vector<16x256xf32>
    %c0_2 = arith.constant 0 : index
    %c0_3 = arith.constant 0 : index
    %4 = vector.load %arg3[%c0_2, %c0_3] : memref<16x256xbf16, #tpu.memory_space<vmem>>, vector<16x256xbf16>
    %c0_4 = arith.constant 0 : index
    %c0_5 = arith.constant 0 : index
    %5 = vector.load %arg4[%c0_4, %c0_5] : memref<256x256xbf16, #tpu.memory_space<vmem>>, vector<256x256xbf16>
    %cst = arith.constant dense<0.000000e+00> : vector<16x256xf32>
    %6 = tpu.matmul %4, %5, %cst {dimension_numbers = #tpu.dot_dimension_numbers<[1], [0], [0], [1], [0, 0, 1, 1], [], []>} : vector<16x256xbf16>, vector<256x256xbf16>, vector<16x256xf32> -> vector<16x256xf32>
    %7 = arith.addf %3, %6 : vector<16x256xf32>
    %c0_6 = arith.constant 0 : index
    %c0_7 = arith.constant 0 : index
    %8 = vector.load %arg8[%c0_6, %c0_7] : memref<16x256xf32, #tpu.memory_space<vmem>>, vector<16x256xf32>
    tpu.vector_store %arg8[%c0_6, %c0_7], %7 {strides = array<i32>} : memref<16x256xf32, #tpu.memory_space<vmem>>, vector<16x256xf32>,
    %c3_i32 = arith.constant 3 : i32
    %9 = arith.cmpi eq, %arg2, %c3_i32 : i32
    %10 = arith.extui %9 : i1 to i32
    %c0_i32_8 = arith.constant 0 : i32
    %11 = arith.cmpi ne, %10, %c0_i32_8 : i32
    scf.if %11 {
      %c0_9 = arith.constant 0 : index
      %c0_10 = arith.constant 0 : index
      %12 = vector.load %arg8[%c0_9, %c0_10] : memref<16x256xf32, #tpu.memory_space<vmem>>, vector<16x256xf32>
      %c0_11 = arith.constant 0 : index
      %c0_12 = arith.constant 0 : index
      %13 = vector.load %arg5[%c0_11, %c0_12] : memref<1x256xf32, #tpu.memory_space<vmem>>, vector<1x256xf32>
      %14 = vector.broadcast %13 : vector<1x256xf32> to vector<16x256xf32>
      %15 = arith.addf %12, %14 : vector<16x256xf32>
      %c0_13 = arith.constant 0 : index
      %c0_14 = arith.constant 0 : index
      %16 = vector.load %arg6[%c0_13, %c0_14] : memref<16x256xbf16, #tpu.memory_space<vmem>>, vector<16x256xbf16>
      %17 = arith.extf %16 : vector<16x256xbf16> to vector<16x256xf32>
      %18 = arith.addf %15, %17 : vector<16x256xf32>
      %19 = arith.truncf %18 : vector<16x256xf32> to vector<16x256xbf16>
      %c0_15 = arith.constant 0 : index
      %c0_16 = arith.constant 0 : index
      %20 = vector.load %arg7[%c0_15, %c0_16] : memref<16x256xbf16, #tpu.memory_space<vmem>>, vector<16x256xbf16>
      tpu.vector_store %arg7[%c0_15, %c0_16], %19 {strides = array<i32>} : memref<16x256xbf16, #tpu.memory_space<vmem>>, vector<16x256xbf16>,
    } else {
    }
    return
  }
  func.func @transform_0(%arg0: i32, %arg1: i32, %arg2: i32) -> (i32, i32) {
    %c0_i32 = arith.constant 0 : i32
    return %arg0, %arg2 : i32, i32
  }
  func.func @transform_1(%arg0: i32, %arg1: i32, %arg2: i32) -> (i32, i32) {
    %c0_i32 = arith.constant 0 : i32
    return %arg2, %arg1 : i32, i32
  }
  func.func @transform_2(%arg0: i32, %arg1: i32, %arg2: i32) -> (i32, i32) {
    %c0_i32 = arith.constant 0 : i32
    %c0_i32_0 = arith.constant 0 : i32
    return %c0_i32, %arg1 : i32, i32
  }
  func.func @transform_3(%arg0: i32, %arg1: i32, %arg2: i32) -> (i32, i32) {
    %c0_i32 = arith.constant 0 : i32
    return %arg0, %arg1 : i32, i32
  }
  func.func @transform_4(%arg0: i32, %arg1: i32, %arg2: i32) -> (i32, i32) {
    %c0_i32 = arith.constant 0 : i32
    return %arg0, %arg1 : i32, i32
  }
}

module attributes {stable_mosaic.version = 11 : i64} {
  func.func @_mm_head_kernel(%arg0: i32, %arg1: i32, %arg2: i32, %arg3: memref<16x256xbf16, #tpu.memory_space<vmem>>, %arg4: memref<256x128xbf16, #tpu.memory_space<vmem>>, %arg5: memref<1x128xf32, #tpu.memory_space<vmem>>, %arg6: memref<16x128xf32, #tpu.memory_space<vmem>>, %arg7: memref<16x128xf32, #tpu.memory_space<vmem>>, %arg8: memref<16x128xf32, #tpu.memory_space<vmem>>) attributes {dimension_semantics = [#tpu.dimension_semantics<parallel>, #tpu.dimension_semantics<parallel>, #tpu.dimension_semantics<arbitrary>], iteration_bounds = array<i64: 1, 1, 1>, scalar_prefetch = 0 : i64, scratch_operands = 1 : i64, tpu.core_type = #tpu.core_type<tc>, window_params = [{transform_indices = @transform_0, window_bounds = array<i64: 16, 256>}, {transform_indices = @transform_1, window_bounds = array<i64: 256, 128>}, {transform_indices = @transform_2, window_bounds = array<i64: 1, 128>}, {transform_indices = @transform_3, window_bounds = array<i64: 16, 128>}, {transform_indices = @transform_4, window_bounds = array<i64: 16, 128>}]} {
    %c0_i32 = arith.constant 0 : i32
    %0 = arith.cmpi eq, %arg2, %c0_i32 : i32
    %1 = arith.extui %0 : i1 to i32
    %c0_i32_0 = arith.constant 0 : i32
    %2 = arith.cmpi ne, %1, %c0_i32_0 : i32
    scf.if %2 {
      %cst_10 = arith.constant 0.000000e+00 : f32
      %12 = vector.broadcast %cst_10 : f32 to vector<16x128xf32>
      %c0_11 = arith.constant 0 : index
      %c0_12 = arith.constant 0 : index
      %13 = vector.load %arg8[%c0_11, %c0_12] : memref<16x128xf32, #tpu.memory_space<vmem>>, vector<16x128xf32>
      tpu.vector_store %arg8[%c0_11, %c0_12], %12 {strides = array<i32>} : memref<16x128xf32, #tpu.memory_space<vmem>>, vector<16x128xf32>,
    } else {
    }
    %c0 = arith.constant 0 : index
    %c0_1 = arith.constant 0 : index
    %3 = vector.load %arg8[%c0, %c0_1] : memref<16x128xf32, #tpu.memory_space<vmem>>, vector<16x128xf32>
    %c0_2 = arith.constant 0 : index
    %c0_3 = arith.constant 0 : index
    %4 = vector.load %arg3[%c0_2, %c0_3] : memref<16x256xbf16, #tpu.memory_space<vmem>>, vector<16x256xbf16>
    %c0_4 = arith.constant 0 : index
    %c0_5 = arith.constant 0 : index
    %5 = vector.load %arg4[%c0_4, %c0_5] : memref<256x128xbf16, #tpu.memory_space<vmem>>, vector<256x128xbf16>
    %cst = arith.constant dense<0.000000e+00> : vector<16x128xf32>
    %6 = tpu.matmul %4, %5, %cst {dimension_numbers = #tpu.dot_dimension_numbers<[1], [0], [0], [1], [0, 0, 1, 1], [], []>} : vector<16x256xbf16>, vector<256x128xbf16>, vector<16x128xf32> -> vector<16x128xf32>
    %7 = arith.addf %3, %6 : vector<16x128xf32>
    %c0_6 = arith.constant 0 : index
    %c0_7 = arith.constant 0 : index
    %8 = vector.load %arg8[%c0_6, %c0_7] : memref<16x128xf32, #tpu.memory_space<vmem>>, vector<16x128xf32>
    tpu.vector_store %arg8[%c0_6, %c0_7], %7 {strides = array<i32>} : memref<16x128xf32, #tpu.memory_space<vmem>>, vector<16x128xf32>,
    %c0_i32_8 = arith.constant 0 : i32
    %9 = arith.cmpi eq, %arg2, %c0_i32_8 : i32
    %10 = arith.extui %9 : i1 to i32
    %c0_i32_9 = arith.constant 0 : i32
    %11 = arith.cmpi ne, %10, %c0_i32_9 : i32
    scf.if %11 {
      %c0_10 = arith.constant 0 : index
      %c0_11 = arith.constant 0 : index
      %12 = vector.load %arg8[%c0_10, %c0_11] : memref<16x128xf32, #tpu.memory_space<vmem>>, vector<16x128xf32>
      %c0_12 = arith.constant 0 : index
      %c0_13 = arith.constant 0 : index
      %13 = vector.load %arg5[%c0_12, %c0_13] : memref<1x128xf32, #tpu.memory_space<vmem>>, vector<1x128xf32>
      %14 = vector.broadcast %13 : vector<1x128xf32> to vector<16x128xf32>
      %15 = arith.addf %12, %14 : vector<16x128xf32>
      %c0_14 = arith.constant 0 : index
      %c0_15 = arith.constant 0 : index
      %16 = vector.load %arg6[%c0_14, %c0_15] : memref<16x128xf32, #tpu.memory_space<vmem>>, vector<16x128xf32>
      tpu.vector_store %arg6[%c0_14, %c0_15], %15 {strides = array<i32>} : memref<16x128xf32, #tpu.memory_space<vmem>>, vector<16x128xf32>,
      %cst_16 = arith.constant 0.000000e+00 : f32
      %17 = vector.broadcast %cst_16 : f32 to vector<16x128xf32>
      %18 = arith.subf %17, %15 : vector<16x128xf32>
      %19 = math.exp %18 : vector<16x128xf32>
      %cst_17 = arith.constant 1.000000e+00 : f32
      %20 = vector.broadcast %cst_17 : f32 to vector<16x128xf32>
      %21 = arith.addf %20, %19 : vector<16x128xf32>
      %cst_18 = arith.constant 1.000000e+00 : f32
      %22 = vector.broadcast %cst_18 : f32 to vector<16x128xf32>
      %23 = arith.divf %22, %21 : vector<16x128xf32>
      %c0_19 = arith.constant 0 : index
      %c0_20 = arith.constant 0 : index
      %24 = vector.load %arg7[%c0_19, %c0_20] : memref<16x128xf32, #tpu.memory_space<vmem>>, vector<16x128xf32>
      tpu.vector_store %arg7[%c0_19, %c0_20], %23 {strides = array<i32>} : memref<16x128xf32, #tpu.memory_space<vmem>>, vector<16x128xf32>,
    } else {
    }
    return
  }
  func.func @transform_0(%arg0: i32, %arg1: i32, %arg2: i32) -> (i32, i32) {
    %c0_i32 = arith.constant 0 : i32
    return %arg0, %arg2 : i32, i32
  }
  func.func @transform_1(%arg0: i32, %arg1: i32, %arg2: i32) -> (i32, i32) {
    %c0_i32 = arith.constant 0 : i32
    return %arg2, %arg1 : i32, i32
  }
  func.func @transform_2(%arg0: i32, %arg1: i32, %arg2: i32) -> (i32, i32) {
    %c0_i32 = arith.constant 0 : i32
    %c0_i32_0 = arith.constant 0 : i32
    return %c0_i32, %arg1 : i32, i32
  }
  func.func @transform_3(%arg0: i32, %arg1: i32, %arg2: i32) -> (i32, i32) {
    %c0_i32 = arith.constant 0 : i32
    return %arg0, %arg1 : i32, i32
  }
  func.func @transform_4(%arg0: i32, %arg1: i32, %arg2: i32) -> (i32, i32) {
    %c0_i32 = arith.constant 0 : i32
    return %arg0, %arg1 : i32, i32
  }
}

</mosaic_0001>

<bundles_post_ra>
// kernel: vit_forward.33
= control target key start
LH: loop header
LB: loop body
LE: loop exit
PB: predicated region body
PF: predicated region fallthrough
CT: control target
= control target key end

     0   :  { %s270_s9 = smov 0   ;;  %s293_s0 = inlined_call_operand.vmem [shape: bf16[2,5,256], index: 0, kind: input, shape index: {}]   ;;  %s294_s1 = inlined_call_operand.vmem [shape: f32[1,5,256], index: 1, kind: input, shape index: {}]   ;;  %s295_s2 = inlined_call_operand.vmem [shape: bf16[2,5,256], index: 2, kind: output, shape index: {}]  }
   0x1 LB: > { %s224_s10 = sadd.s32 4294967295, %s253_s9   ;;  %p228_p0 = scmp.ge.s32.totalorder %s253_s9, 1  ;;  %s253_s9 = sphi %s270_s9, %s12_s9  }
   0x2   : > { %p112_p1 = scmp.lt.s32.totalorder %s253_s9, 3 }
   0x4   : > { %p113_p2 = pnand %p228_p0, %p112_p1 }
   0x5   : > { %p134_p3 = scmp.lt.s32.totalorder (!%p113_p2), %s224_s10, 1  ;;  %vm159_vm0 = vcmask (!%p113_p2), 1042432   ;;  %vm160_vm1 = vsmask.f32 (!%p113_p2), 2304  ;;  %vm162_vm2 = vcmask (!%p113_p2), 1046532  }
   0x6   : > { %116 = sbr.rel (%p113_p2) target bundleno = 25 (0x19), region = 28  ;;  %vm163_vm3 = vsmask.f32 (!%p113_p2), 6400  ;;  %v147_v0 = vld [vmem:[%s294_s1] sm:$0x1f] (!%p113_p2)  ;;  %vm161_vm4 = vmand (!%p113_p2), %vm159_vm0, %vm160_vm1 }
   0x7   : > { %v148_v2 = vld [vmem:[%s294_s1 + $0x8] sm:$0x1f] (!%p113_p2)  ;;  %vm164_vm5 = vmand (!%p113_p2), %vm162_vm2, %vm163_vm3 }
   0x8   : > { %vm165_vm6 = vmor (!%p113_p2), %vm164_vm5, %vm161_vm4 }
   0xd   : > { %s297_s10 = smov (!%p134_p3, %s224_s10), 1 }
   0xe   : > { %s236_s11 = sshll.u32 %s297_s10, 3 }
   0xf   : > { %s138_s14 = scalar_lea.vmem %s293_s0, %s236_s11  ;;  %s143_s21 = scalar_lea.vmem %s295_s2, %s236_s11 }
  0x10   : > { %v144_v1 = vld [vmem:[%s138_s14] sm:$0x77] }
  0x11   : > { %v145_v3 = vunpack.c.l.bf16 %v144_v1  ;;  %v146_v4 = vunpack.c.h.bf16 %v144_v1  ;;  %v166_v7 = vld [vmem:[%s143_s21] sm:$0x77] }
  0x13   : > { %v149_v5 = vadd.f32 %v147_v0, %v145_v3  ;;  %v150_v6 = vadd.f32 %v148_v2, %v146_v4 }
  0x15   : > { %v238_v8 = vpack.c.bf16 %v150_v6, %v149_v5 }
  0x17   : > { %v167_v9 = vsel %vm165_vm6, %v238_v8, %v166_v7 }
  0x18   : > { %168 = vst [vmem:[%s143_s21] sm:$0x77] %v167_v9 }
  0x19 PF: > { %s12_s9 = sadd.s32 1, %s253_s9  }
  0x1a   : > { %p9_p4 = scmp.ge.s32.totalorder %s12_s9, 4  }
  0x1c   :  { %11 = sbr.rel (!%p9_p4) target bundleno = 1 (0x1), region = 58 }

// kernel: vit_forward.34
= control target key start
LH: loop header
LB: loop body
LE: loop exit
PB: predicated region body
PF: predicated region fallthrough
CT: control target
= control target key end

     0   :  { %v55_v24 = vlaneseq  ;;  %s149_s0 = inlined_call_operand.vmem [shape: bf16[16,256], index: 0, kind: input, shape index: {}]   ;;  %s150_s1 = inlined_call_operand.vmem [shape: f32[1,256], index: 1, kind: input, shape index: {}]   ;;  %s151_s2 = inlined_call_operand.vmem [shape: f32[1,256], index: 2, kind: input, shape index: {}]   ;;  %s152_s3 = inlined_call_operand.vmem [shape: bf16[16,256], index: 3, kind: output, shape index: {}]  }
   0x1   :  { %v14_v0 = vld [vmem:[%s149_s0] sm:$0xff]  ;;  %v15_v1 = vld [vmem:[%s149_s0 + $0x8] sm:$0xff] }
   0x2   :  { %v16_v2 = vunpack.c.l.bf16 %v14_v0  ;;  %v17_v3 = vunpack.c.h.bf16 %v14_v0  ;;  %v18_v4 = vunpack.c.l.bf16 %v15_v1  ;;  %v19_v5 = vunpack.c.h.bf16 %v15_v1  ;;  %v53_v32 = vld [vmem:[%s150_s1] sm:$0x3] }
   0x3   :  { %v56_v28 = vshrl.u32 %v55_v24, 7  ;;  %v69_v33 = vld [vmem:[%s151_s2] sm:$0x3] }
   0x4   :  { %v20_v6 = vadd.f32 %v17_v3, %v16_v2  ;;  %v23_v7 = vadd.f32 %v19_v5, %v18_v4 }
   0x5   :  { %v57_v30 = vsub.s32 0, %v56_v28  ;;  %v61_v31 = vsub.s32 1, %v56_v28 }
   0x6   :  { %21 = vadd.xlane.f32.xlu0 %v20_v6 }
   0x7   :  { %v58_v34 = vrot.slane %v53_v32, %v57_v30  ;;  %v62_v35 = vrot.slane %v53_v32, %v61_v31  ;;  %v74_v37 = vrot.slane %v69_v33, %v57_v30  ;;  %v78_v38 = vrot.slane %v69_v33, %v61_v31 }
   0xa   :  { %24 = vadd.xlane.f32.xlu0 %v23_v7 }
  0x93   :  { %v22_v8 = vpop.xlane.xlu0 %21 }
  0x94   :  { %v27_v9 = vmul.f32 0.00390625, %v22_v8 }
  0x96   :  { %v29_v10 = vsub.f32 %v16_v2, %v27_v9  ;;  %v30_v11 = vsub.f32 %v17_v3, %v27_v9 }
  0x97   :  { %v25_v12 = vpop.xlane.xlu0 %24 }
  0x98   :  { %v28_v13 = vmul.f32 0.00390625, %v25_v12  ;;  %v33_v14 = vmul.f32 %v29_v10, %v29_v10  ;;  %v34_v15 = vmul.f32 %v30_v11, %v30_v11 }
  0x9a   :  { %v31_v16 = vsub.f32 %v18_v4, %v28_v13  ;;  %v32_v17 = vsub.f32 %v19_v5, %v28_v13  ;;  %v37_v18 = vadd.f32 %v34_v15, %v33_v14 }
  0x9c   :  { %38 = vadd.xlane.f32.xlu1 %v37_v18  ;;  %v35_v19 = vmul.f32 %v31_v16, %v31_v16  ;;  %v36_v20 = vmul.f32 %v32_v17, %v32_v17 }
  0x9e   :  { %v40_v21 = vadd.f32 %v36_v20, %v35_v19 }
  0xa0   :  { %41 = vadd.xlane.f32.xlu1 %v40_v21 }
 0x129   :  { %v39_v22 = vpop.xlane.xlu1 %38 }
 0x12a   :  { %v43_v23 = vmul.f32 0.00390625, %v39_v22 }
 0x12c   :  { %v45_v25 = vadd.f32 1e-06, %v43_v23 }
 0x12d   :  { %v42_v26 = vpop.xlane.xlu1 %41 }
 0x12e   :  { %107 = vrsqrt.f32 %v45_v25  ;;  %v44_v27 = vmul.f32 0.00390625, %v42_v26 }
 0x130   :  { %v46_v29 = vadd.f32 1e-06, %v44_v27 }
 0x132   :  { %109 = vrsqrt.f32 %v46_v29 }
 0x138   :  { %v108_v36 = vpop.eup %107 }
 0x139   :  { %v49_v39 = vmul.f32 %v108_v36, %v29_v10  ;;  %v50_v40 = vmul.f32 %v108_v36, %v30_v11 }
 0x13b   :  { %v65_v41 = vmul.f32 %v58_v34, %v49_v39  ;;  %v66_v42 = vmul.f32 %v62_v35, %v50_v40 }
 0x13c   :  { %v110_v43 = vpop.eup %109 }
 0x13d   :  { %v81_v44 = vadd.f32 %v74_v37, %v65_v41  ;;  %v82_v45 = vadd.f32 %v78_v38, %v66_v42  ;;  %v51_v46 = vmul.f32 %v110_v43, %v31_v16  ;;  %v52_v47 = vmul.f32 %v110_v43, %v32_v17 }
 0x13f   :  { %v105_v48 = vpack.c.bf16 %v82_v45, %v81_v44  ;;  %v67_v49 = vmul.f32 %v58_v34, %v51_v46  ;;  %v68_v50 = vmul.f32 %v62_v35, %v52_v47 }
 0x141   :  { %97 = vst [vmem:[%s152_s3] sm:$0xff] %v105_v48  ;;  %v83_v51 = vadd.f32 %v74_v37, %v67_v49  ;;  %v84_v52 = vadd.f32 %v78_v38, %v68_v50 }
 0x143   :  { %v106_v53 = vpack.c.bf16 %v84_v52, %v83_v51 }
 0x145   :  { %98 = vst [vmem:[%s152_s3 + $0x8] sm:$0xff] %v106_v53 }

// kernel: vit_forward.32
= control target key start
LH: loop header
LB: loop body
LE: loop exit
PB: predicated region body
PF: predicated region fallthrough
CT: control target
= control target key end

     0   :  { %s949_s12 = smov 0   ;;  %s951_s13 = smov 0   ;;  %s1066_s0 = inlined_call_operand.vmem [shape: bf16[16,768], index: 0, kind: input, shape index: {}]   ;;  %s1067_s1 = inlined_call_operand.vmem [shape: bf16[768,256], index: 1, kind: input, shape index: {}]   ;;  %s1068_s2 = inlined_call_operand.vmem [shape: f32[1,256], index: 2, kind: input, shape index: {}]   ;;  %s1069_s3 = inlined_call_operand.vmem [shape: bf16[16,256], index: 3, kind: output, shape index: {}]  }
   0x1   :  { %s953_s14 = smov 0   ;;  %s955_s15 = smov 0  }
   0x2   :  { %s957_s16 = smov 0  }
   0x3 LB: > { %s25_s17 = sadd.s32 1, %s922_s15  ;;  %p48_p1 = scmp.ne.s32.totalorder %s914_s13, %s910_s12  ;;  %s926_s16 = sphi %s957_s16, %s13_s16   ;;  %s922_s15 = sphi %s955_s15, %s1073_s15   ;;  %s918_s14 = sphi %s953_s14, %s1072_s14   ;;  %s914_s13 = sphi %s951_s13, %s1071_s13   ;;  %s910_s12 = sphi %s949_s12, %s1070_s12  }
   0x4   : > { %p26_p0 = scmp.ge.s32.totalorder %s25_s17, 3  ;;  %p49_p2 = scmp.eq.s32.totalorder %s926_s16, 0 }
   0x5   : > { %s41_s19 = sadd.s32 1, %s914_s13  ;;  %p741_p5 = scmp.ge.s32.totalorder %s926_s16, 3 }
   0x6   : > { %s1075_s17 = smov (%p26_p0, %s25_s17), 0  ;;  %p50_p3 = por %p49_p2, %p48_p1 }
   0x7   : > { %s37_s18 = ssub.s32 %s922_s15, %s1075_s17  ;;  %164 = sbr.rel (%p741_p5) target bundleno = 21 (0x15), region = 20 }
   0x8   : > { %p39_p4 = scmp.eq.s32.totalorder %s37_s18, 0 }
   0xa   : > { %s984_s20 = scalar_select %p39_p4, %s914_s13, %s41_s19  }
   0xe   : > { %167 = sbr.rel (!%p50_p3) target bundleno = 21 (0x15), region = 24  ;;  %s169_s21 = sand.u32 (%p50_p3), 1, %s914_s13  }
   0xf   : > { %s792_s22 = sshll.u32 (%p50_p3), %s922_s15, 3  ;;  %s742_s23 = sshll.u32 (%p50_p3), %s169_s21, 4 }
  0x10   : > { %s177_s26 = scalar_lea.vmem (%p50_p3), %s1066_s0, %s792_s22  ;;  %s171_s27 = scalar_lea.vmem (%p50_p3), [#allocation3], %s742_s23 }
  0x11   : > { %v207_v0 = vld [vmem:[%s177_s26] sm:$0xff] (%p50_p3)  ;;  %v209_v1 = vld [vmem:[%s177_s26 + $0x18] sm:$0xff] (%p50_p3) }
  0x12   : > { %208 = vst [vmem:[%s171_s27] sm:$0xff] (%p50_p3), %v207_v0  ;;  %210 = vst [vmem:[%s171_s27 + $0x8] sm:$0xff] (%p50_p3), %v209_v1 }
  0x15 PF: > { %p745_p6 = scmp.ge.s32.totalorder %s926_s16, 1  ;;  %p230_p7 = scmp.lt.s32.totalorder %s926_s16, 4 }
  0x17   : > { %p231_p8 = pnand %p745_p6, %p230_p7 }
  0x18   : > { %s237_s28 = sand.u32 (!%p231_p8), 1, %s910_s12   ;;  %s747_s29 = sshll.u32 (!%p231_p8), %s918_s14, 5 }
  0x19   : > { %234 = sbr.rel (%p231_p8) target bundleno = 334 (0x14e), region = 66  ;;  %s996_s30 = sshll.u32 (!%p231_p8), %s237_s28, 4 }
  0x1a   : > { %p283_p9 = scmp.lt.s32.totalorder (!%p231_p8), %s747_s29, 95  ;;  %s239_s8 = scalar_lea.vmem (!%p231_p8), [#allocation3], %s996_s30 }
  0x1b   : > { %p750_p10 = scmp.ne.s32.totalorder (!%p231_p8), %s918_s14, 0 }
  0x20   : > { %s1077_s29 = smov (!%p283_p9, %s747_s29), 95  ;;  %313 = sbr.rel (%p750_p10) target bundleno = 39 (0x27), region = 74 }
  0x21   : > { %s793_s4 = sshll.u32 %s1077_s29, 3  ;;  %v928_v2 = vmov (!%p750_p10), 0.0  }
  0x22   : > { %s1001_s7 = scalar_lea.vmem %s1067_s1, %s793_s4  ;;  %314 = vst [vmem:[#allocation2] sm:$0xff] (!%p750_p10), %v928_v2  ;;  %315 = vst [vmem:[#allocation2 + $0x8] sm:$0xff] (!%p750_p10), %v928_v2 }
  0x23   : > { %316 = vst [vmem:[#allocation2 + $0x10] sm:$0xff] (!%p750_p10), %v928_v2  ;;  %317 = vst [vmem:[#allocation2 + $0x18] sm:$0xff] (!%p750_p10), %v928_v2 }
  0x27 PF: > { %v837_v3 = vld [vmem:[%s1001_s7 + $0x4] ss:$8 sps:$4 sm:$0xff]   ;;  %v839_v4 = vld [vmem:[%s1001_s7] ss:$8 sps:$4 sm:$0xff]   ;;  %v840_v5 = vld [vmem:[%s1001_s7 + $0x14] ss:$8 sps:$4 sm:$0xff]  }
  0x28   : > { %526 = vmatprep.subr.bf16.mxu0 %v837_v3  ;;  %v842_v6 = vld [vmem:[%s1001_s7 + $0x10] ss:$8 sps:$4 sm:$0xff]   ;;  %v843_v7 = vld [vmem:[%s1001_s7 + $0x24] ss:$8 sps:$4 sm:$0xff]   ;;  %v845_v8 = vld [vmem:[%s1001_s7 + $0x20] ss:$8 sps:$4 sm:$0xff]  }
  0x29   : > { %527 = vmatpush1.bf16.msra.mxu0 %v839_v4  ;;  %v846_v9 = vld [vmem:[%s1001_s7 + $0x34] ss:$8 sps:$4 sm:$0xff]   ;;  %v848_v10 = vld [vmem:[%s1001_s7 + $0x30] ss:$8 sps:$4 sm:$0xff]   ;;  %v849_v11 = vld [vmem:[%s1001_s7 + $0x44] ss:$8 sps:$4 sm:$0xff]  }
  0x2a   : > { %528 = vmatprep.subr.bf16.mxu0 %v840_v5  ;;  %v851_v12 = vld [vmem:[%s1001_s7 + $0x40] ss:$8 sps:$4 sm:$0xff]   ;;  %v852_v13 = vld [vmem:[%s1001_s7 + $0x54] ss:$8 sps:$4 sm:$0xff]   ;;  %v854_v14 = vld [vmem:[%s1001_s7 + $0x50] ss:$8 sps:$4 sm:$0xff]  }
  0x2b   : > { %v855_v15 = vld [vmem:[%s1001_s7 + $0x64] ss:$8 sps:$4 sm:$0xff]   ;;  %v857_v17 = vld [vmem:[%s1001_s7 + $0x60] ss:$8 sps:$4 sm:$0xff]   ;;  %v858_v18 = vld [vmem:[%s1001_s7 + $0x74] ss:$8 sps:$4 sm:$0xff]  }
  0x2c   : > { %v887_v16 = vld [vmem:[%s239_s8 + $0x4] ss:$8 sps:$4 sm:$0xff]   ;;  %v860_v19 = vld [vmem:[%s1001_s7 + $0x70] ss:$8 sps:$4 sm:$0xff]   ;;  %v863_v21 = vld [vmem:[%s1001_s7 + $0x80] ss:$8 sps:$4 sm:$0xff]  }
  0x2d   : > { %529 = vmatpush1.bf16.msra.mxu0 %v842_v6  ;;  %558 = vmatprep.mubr.bf16.mxu0 %v887_v16  ;;  %v861_v20 = vld [vmem:[%s1001_s7 + $0x84] ss:$8 sps:$4 sm:$0xff]   ;;  %v864_v22 = vld [vmem:[%s1001_s7 + $0x94] ss:$8 sps:$4 sm:$0xff]   ;;  %v866_v23 = vld [vmem:[%s1001_s7 + $0x90] ss:$8 sps:$4 sm:$0xff]  }
  0x2e   : > { %530 = vmatprep.subr.bf16.mxu0 %v843_v7  ;;  %v867_v24 = vld [vmem:[%s1001_s7 + $0xa4] ss:$8 sps:$4 sm:$0xff]   ;;  %v869_v25 = vld [vmem:[%s1001_s7 + $0xa0] ss:$8 sps:$4 sm:$0xff]   ;;  %v870_v26 = vld [vmem:[%s1001_s7 + $0xb4] ss:$8 sps:$4 sm:$0xff]  }
  0x2f   : > { %v872_v27 = vld [vmem:[%s1001_s7 + $0xb0] ss:$8 sps:$4 sm:$0xff]   ;;  %v873_v28 = vld [vmem:[%s1001_s7 + $0xc4] ss:$8 sps:$4 sm:$0xff]   ;;  %v875_v29 = vld [vmem:[%s1001_s7 + $0xc0] ss:$8 sps:$4 sm:$0xff]  }
  0x30   : > { %v876_v30 = vld [vmem:[%s1001_s7 + $0xd4] ss:$8 sps:$4 sm:$0xff]   ;;  %v878_v31 = vld [vmem:[%s1001_s7 + $0xd0] ss:$8 sps:$4 sm:$0xff]   ;;  %v879_v32 = vld [vmem:[%s1001_s7 + $0xe4] ss:$8 sps:$4 sm:$0xff]  }
  0x31   : > { %531 = vmatpush1.bf16.msra.mxu0 %v845_v8  ;;  %v881_v33 = vld [vmem:[%s1001_s7 + $0xe0] ss:$8 sps:$4 sm:$0xff]   ;;  %v882_v34 = vld [vmem:[%s1001_s7 + $0xf4] ss:$8 sps:$4 sm:$0xff]   ;;  %v884_v35 = vld [vmem:[%s1001_s7 + $0xf0] ss:$8 sps:$4 sm:$0xff]  }
  0x32   : > { %532 = vmatprep.subr.bf16.mxu0 %v846_v9  ;;  %v885_v36 = vld [vmem:[%s239_s8] ss:$8 sps:$4 sm:$0xff]   ;;  %p785_p11 = scmp.ne.s32.totalorder %s918_s14, 2 }
  0x33   : > { %v318_v37 = vld [vmem:[#allocation2] sm:$0xff]  ;;  %v319_v38 = vld [vmem:[#allocation2 + $0x8] sm:$0xff]  ;;  %v320_v40 = vld [vmem:[#allocation2 + $0x10] sm:$0xff]  ;;  %v587_v49 = vlaneseq (!%p785_p11) }
  0x34   : > { %v321_v43 = vld [vmem:[#allocation2 + $0x18] sm:$0xff]  ;;  %v585_v51 = vld [vmem:[%s1068_s2] sm:$0x3] (!%p785_p11) }
  0x35   : > { %533 = vmatpush1.bf16.msra.mxu0 %v848_v10  ;;  %v588_v50 = vshrl.u32 (!%p785_p11), %v587_v49, 7 }
  0x36   : > { %534 = vmatprep.subr.bf16.mxu0 %v849_v11 }
  0x37   : > { %v589_v53 = vsub.s32 (!%p785_p11), 0, %v588_v50  ;;  %v593_v54 = vsub.s32 (!%p785_p11), 1, %v588_v50 }
  0x39   : > { %535 = vmatpush1.bf16.msra.mxu0 %v851_v12  ;;  %v590_v58 = vrot.slane (!%p785_p11), %v585_v51, %v589_v53  ;;  %v594_v59 = vrot.slane (!%p785_p11), %v585_v51, %v593_v54 }
  0x3a   : > { %536 = vmatprep.subr.bf16.mxu0 %v852_v13 }
  0x3d   : > { %537 = vmatpush1.bf16.msra.mxu0 %v854_v14 }
  0x3e   : > { %538 = vmatprep.subr.bf16.mxu0 %v855_v15 }
  0x41   : > { %539 = vmatpush1.bf16.msra.mxu0 %v857_v17 }
  0x42   : > { %540 = vmatprep.subr.bf16.mxu0 %v858_v18 }
  0x45   : > { %541 = vmatpush1.bf16.msra.mxu0 %v860_v19 }
  0x46   : > { %542 = vmatprep.subr.bf16.mxu0 %v861_v20 }
  0x49   : > { %543 = vmatpush1.bf16.msra.mxu0 %v863_v21 }
  0x4a   : > { %544 = vmatprep.subr.bf16.mxu0 %v864_v22 }
  0x4d   : > { %545 = vmatpush1.bf16.msra.mxu0 %v866_v23 }
  0x4e   : > { %546 = vmatprep.subr.bf16.mxu0 %v867_v24 }
  0x51   : > { %547 = vmatpush1.bf16.msra.mxu0 %v869_v25 }
  0x52   : > { %548 = vmatprep.subr.bf16.mxu0 %v870_v26 }
  0x55   : > { %549 = vmatpush1.bf16.msra.mxu0 %v872_v27 }
  0x56   : > { %550 = vmatprep.subr.bf16.mxu0 %v873_v28 }
  0x59   : > { %551 = vmatpush1.bf16.msra.mxu0 %v875_v29 }
  0x5a   : > { %552 = vmatprep.subr.bf16.mxu0 %v876_v30 }
  0x5d   : > { %553 = vmatpush1.bf16.msra.mxu0 %v878_v31 }
  0x5e   : > { %554 = vmatprep.subr.bf16.mxu0 %v879_v32 }
  0x61   : > { %555 = vmatpush1.bf16.msra.mxu0 %v881_v33 }
  0x62   : > { %556 = vmatprep.subr.bf16.mxu0 %v882_v34 }
  0x65   : > { %557 = vmatpush1.bf16.msra.mxu0 %v884_v35 }
  0x68   : > { %559 = vmatmul.mubr.bf16.vlgmr.msra.gmra.mrb[0].mxu0 %v885_v36 }
 0x13b   : > { %v560_v39 = vpop.f32.mrb[0].mxu0  ;;  %580 = sbr.rel (%p785_p11) target bundleno = 334 (0x14e), region = 78 }
 0x13c   : > { %v569_v41 = vadd.f32 %v560_v39, %v318_v37  ;;  %v562_v42 = vpop.f32.mrb[1].mxu0 }
 0x13d   : > { %v570_v44 = vadd.f32 %v562_v42, %v319_v38  ;;  %v564_v45 = vpop.f32.mrb[2].mxu0 }
 0x13e   : > { %573 = vst [vmem:[#allocation2] sm:$0xff] %v569_v41  ;;  %v571_v46 = vadd.f32 %v564_v45, %v320_v40  ;;  %v566_v47 = vpop.f32.mrb[3].mxu0 }
 0x13f   : > { %574 = vst [vmem:[#allocation2 + $0x8] sm:$0xff] %v570_v44  ;;  %v572_v48 = vadd.f32 %v566_v47, %v321_v43 }
 0x140   : > { %575 = vst [vmem:[#allocation2 + $0x10] sm:$0xff] %v571_v46 }
 0x141   : > { %576 = vst [vmem:[#allocation2 + $0x18] sm:$0xff] %v572_v48 }
 0x145   : > { %v581_v52 = vld [vmem:[#allocation2] sm:$0xff] }
 0x146   : > { %v582_v55 = vld [vmem:[#allocation2 + $0x8] sm:$0xff]  ;;  %v597_v60 = vadd.f32 %v590_v58, %v581_v52 }
 0x147   : > { %v583_v56 = vld [vmem:[#allocation2 + $0x10] sm:$0xff]  ;;  %v598_v61 = vadd.f32 %v594_v59, %v582_v55 }
 0x148   : > { %v584_v57 = vld [vmem:[#allocation2 + $0x18] sm:$0xff]  ;;  %v599_v62 = vadd.f32 %v590_v58, %v583_v56 }
 0x149   : > { %v600_v63 = vadd.f32 %v594_v59, %v584_v57  ;;  %v794_v0 = vpack.c.bf16 %v598_v61, %v597_v60 }
 0x14b   : > { %v795_v1 = vpack.c.bf16 %v600_v63, %v599_v62  ;;  %613 = vst [vmem:[%s1069_s3] sm:$0xff] %v794_v0 }
 0x14d   : > { %614 = vst [vmem:[%s1069_s3 + $0x8] sm:$0xff] %v795_v1 }
 0x14e PF: > { %s13_s16 = sadd.s32 1, %s926_s16   ;;  %s1070_s12 = smov %s914_s13 }
 0x14f   : > { %p10_p12 = scmp.ge.s32.totalorder %s13_s16, 5   ;;  %s1071_s13 = smov %s984_s20 }
 0x150   : > { %s1072_s14 = smov %s922_s15  ;;  %s1073_s15 = smov %s1075_s17 }
 0x151   :  { %12 = sbr.rel (!%p10_p12) target bundleno = 3 (0x3), region = 119 }

// kernel: vit_forward.35
= control target key start
LH: loop header
LB: loop body
LE: loop exit
PB: predicated region body
PF: predicated region fallthrough
CT: control target
= control target key end

     0   :  { %s1079_s12 = smov 0   ;;  %s1081_s13 = smov 0   ;;  %s1267_s0 = inlined_call_operand.vmem [shape: bf16[16,256], index: 0, kind: input, shape index: {}]   ;;  %s1268_s1 = inlined_call_operand.vmem [shape: bf16[256,768], index: 1, kind: input, shape index: {}]   ;;  %s1269_s2 = inlined_call_operand.vmem [shape: f32[1,768], index: 2, kind: input, shape index: {}]   ;;  %s1270_s3 = inlined_call_operand.vmem [shape: bf16[16,768], index: 3, kind: output, shape index: {}]  }
   0x1   :  { %s1083_s14 = smov 0   ;;  %s1085_s15 = smov 0  }
   0x2   :  { %s1087_s16 = smov 0  }
   0x3 LB: > { %s28_s17 = sadd.s32 1, %s1053_s15  ;;  %s871_s18 = sadd.s32 4294967295, %s1057_s16   ;;  %s1057_s16 = sphi %s1087_s16, %s13_s16   ;;  %s1053_s15 = sphi %s1085_s15, %s1275_s15   ;;  %s1049_s14 = sphi %s1083_s14, %s1274_s14   ;;  %s1045_s13 = sphi %s1081_s13, %s1273_s13   ;;  %s1041_s12 = sphi %s1079_s12, %s1272_s12  }
   0x4   : > { %p30_p0 = scmp.ge.s32.totalorder %s28_s17, 3  ;;  %p76_p1 = scmp.ne.s32.totalorder %s1045_s13, %s1041_s12 }
   0x5   : > { %p77_p2 = scmp.eq.s32.totalorder %s1057_s16, 0  ;;  %p134_p4 = scmp.eq.s32.totalorder %s871_s18, 2 }
   0x6   : > { %s1277_s17 = smov (%p30_p0, %s28_s17), 0  ;;  %s69_s20 = sadd.s32 1, %s1045_s13 }
   0x7   : > { %p78_p3 = por %p77_p2, %p76_p1  ;;  %s65_s19 = ssub.s32 %s1053_s15, %s1277_s17 }
   0x8   : > { %p67_p5 = scmp.eq.s32.totalorder %s65_s19, 0  ;;  %p1114_p6 = por %p134_p4, %p76_p1 }
   0x9   : > { %p875_p7 = scmp.ge.s32.totalorder %s1057_s16, 3 }
   0xa   : > { %s1119_s22 = scalar_select %p67_p5, %s1045_s13, %s69_s20  }
   0xb   : > { %171 = sbr.rel (%p875_p7) target bundleno = 38 (0x26), region = 20 }
  0x12   : > { %174 = sbr.rel (!%p78_p3) target bundleno = 38 (0x26), region = 24  ;;  %s176_s23 = sand.u32 (%p78_p3), 1, %s1045_s13  }
  0x13   : > { %s924_s24 = sshll.u32 (%p78_p3), %s1053_s15, 3  ;;  %s876_s25 = sshll.u32 (%p78_p3), %s176_s23, 8 }
  0x14   : > { %s1127_s28 = scalar_lea.vmem (%p78_p3), %s1268_s1, %s924_s24  ;;  %s1132_s29 = scalar_lea.vmem (%p78_p3), [#allocation3], %s876_s25 }
  0x15   : > { %v274_v0 = vld [vmem:[%s1127_s28] sm:$0xff] (%p78_p3)  ;;  %v276_v1 = vld [vmem:[%s1127_s28 + $0x18] sm:$0xff] (%p78_p3)  ;;  %v278_v2 = vld [vmem:[%s1127_s28 + $0x30] sm:$0xff] (%p78_p3) }
  0x16   : > { %275 = vst [vmem:[%s1132_s29] sm:$0xff] (%p78_p3), %v274_v0  ;;  %277 = vst [vmem:[%s1132_s29 + $0x8] sm:$0xff] (%p78_p3), %v276_v1  ;;  %v280_v3 = vld [vmem:[%s1127_s28 + $0x48] sm:$0xff] (%p78_p3)  ;;  %v282_v4 = vld [vmem:[%s1127_s28 + $0x60] sm:$0xff] (%p78_p3) }
  0x17   : > { %279 = vst [vmem:[%s1132_s29 + $0x10] sm:$0xff] (%p78_p3), %v278_v2  ;;  %v284_v5 = vld [vmem:[%s1127_s28 + $0x78] sm:$0xff] (%p78_p3)  ;;  %281 = vst [vmem:[%s1132_s29 + $0x18] sm:$0xff] (%p78_p3), %v280_v3  ;;  %v286_v6 = vld [vmem:[%s1127_s28 + $0x90] sm:$0xff] (%p78_p3) }
  0x18   : > { %283 = vst [vmem:[%s1132_s29 + $0x20] sm:$0xff] (%p78_p3), %v282_v4  ;;  %285 = vst [vmem:[%s1132_s29 + $0x28] sm:$0xff] (%p78_p3), %v284_v5  ;;  %v288_v7 = vld [vmem:[%s1127_s28 + $0xa8] sm:$0xff] (%p78_p3)  ;;  %v290_v8 = vld [vmem:[%s1127_s28 + $0xc0] sm:$0xff] (%p78_p3) }
  0x19   : > { %287 = vst [vmem:[%s1132_s29 + $0x30] sm:$0xff] %v286_v6  ;;  %289 = vst [vmem:[%s1132_s29 + $0x38] sm:$0xff] %v288_v7  ;;  %v292_v9 = vld [vmem:[%s1127_s28 + $0xd8] sm:$0xff]  ;;  %v294_v10 = vld [vmem:[%s1127_s28 + $0xf0] sm:$0xff] }
  0x1a   : > { %291 = vst [vmem:[%s1132_s29 + $0x40] sm:$0xff] %v290_v8  ;;  %v296_v11 = vld [vmem:[%s1127_s28 + $0x108] sm:$0xff]  ;;  %293 = vst [vmem:[%s1132_s29 + $0x48] sm:$0xff] %v292_v9  ;;  %v298_v12 = vld [vmem:[%s1127_s28 + $0x120] sm:$0xff] }
  0x1b   : > { %295 = vst [vmem:[%s1132_s29 + $0x50] sm:$0xff] %v294_v10  ;;  %297 = vst [vmem:[%s1132_s29 + $0x58] sm:$0xff] %v296_v11  ;;  %v300_v13 = vld [vmem:[%s1127_s28 + $0x138] sm:$0xff]  ;;  %v302_v14 = vld [vmem:[%s1127_s28 + $0x150] sm:$0xff] }
  0x1c   : > { %299 = vst [vmem:[%s1132_s29 + $0x60] sm:$0xff] %v298_v12  ;;  %301 = vst [vmem:[%s1132_s29 + $0x68] sm:$0xff] %v300_v13  ;;  %v304_v15 = vld [vmem:[%s1127_s28 + $0x168] sm:$0xff]  ;;  %v306_v16 = vld [vmem:[%s1127_s28 + $0x180] sm:$0xff] }
  0x1d   : > { %303 = vst [vmem:[%s1132_s29 + $0x70] sm:$0xff] %v302_v14  ;;  %v308_v17 = vld [vmem:[%s1127_s28 + $0x198] sm:$0xff]  ;;  %305 = vst [vmem:[%s1132_s29 + $0x78] sm:$0xff] %v304_v15  ;;  %v310_v18 = vld [vmem:[%s1127_s28 + $0x1b0] sm:$0xff] }
  0x1e   : > { %307 = vst [vmem:[%s1132_s29 + $0x80] sm:$0xff] %v306_v16  ;;  %309 = vst [vmem:[%s1132_s29 + $0x88] sm:$0xff] %v308_v17  ;;  %v312_v19 = vld [vmem:[%s1127_s28 + $0x1c8] sm:$0xff]  ;;  %v314_v20 = vld [vmem:[%s1127_s28 + $0x1e0] sm:$0xff] }
  0x1f   : > { %311 = vst [vmem:[%s1132_s29 + $0x90] sm:$0xff] %v310_v18  ;;  %313 = vst [vmem:[%s1132_s29 + $0x98] sm:$0xff] %v312_v19  ;;  %v316_v21 = vld [vmem:[%s1127_s28 + $0x1f8] sm:$0xff]  ;;  %v318_v22 = vld [vmem:[%s1127_s28 + $0x210] sm:$0xff] }
  0x20   : > { %315 = vst [vmem:[%s1132_s29 + $0xa0] sm:$0xff] %v314_v20  ;;  %v320_v23 = vld [vmem:[%s1127_s28 + $0x228] sm:$0xff]  ;;  %317 = vst [vmem:[%s1132_s29 + $0xa8] sm:$0xff] %v316_v21  ;;  %v322_v24 = vld [vmem:[%s1127_s28 + $0x240] sm:$0xff] }
  0x21   : > { %319 = vst [vmem:[%s1132_s29 + $0xb0] sm:$0xff] %v318_v22  ;;  %321 = vst [vmem:[%s1132_s29 + $0xb8] sm:$0xff] %v320_v23  ;;  %v324_v25 = vld [vmem:[%s1127_s28 + $0x258] sm:$0xff]  ;;  %v326_v26 = vld [vmem:[%s1127_s28 + $0x270] sm:$0xff] }
  0x22   : > { %323 = vst [vmem:[%s1132_s29 + $0xc0] sm:$0xff] %v322_v24  ;;  %325 = vst [vmem:[%s1132_s29 + $0xc8] sm:$0xff] %v324_v25  ;;  %v328_v27 = vld [vmem:[%s1127_s28 + $0x288] sm:$0xff]  ;;  %v330_v28 = vld [vmem:[%s1127_s28 + $0x2a0] sm:$0xff] }
  0x23   : > { %327 = vst [vmem:[%s1132_s29 + $0xd0] sm:$0xff] %v326_v26  ;;  %v332_v29 = vld [vmem:[%s1127_s28 + $0x2b8] sm:$0xff]  ;;  %329 = vst [vmem:[%s1132_s29 + $0xd8] sm:$0xff] %v328_v27  ;;  %v334_v30 = vld [vmem:[%s1127_s28 + $0x2d0] sm:$0xff] }
  0x24   : > { %331 = vst [vmem:[%s1132_s29 + $0xe0] sm:$0xff] %v330_v28  ;;  %333 = vst [vmem:[%s1132_s29 + $0xe8] sm:$0xff] %v332_v29  ;;  %v336_v31 = vld [vmem:[%s1127_s28 + $0x2e8] sm:$0xff] }
  0x25   : > { %335 = vst [vmem:[%s1132_s29 + $0xf0] sm:$0xff] %v334_v30  ;;  %337 = vst [vmem:[%s1132_s29 + $0xf8] sm:$0xff] %v336_v31 }
  0x26 PF: > { %p879_p8 = scmp.ge.s32.totalorder %s1057_s16, 1  ;;  %p350_p9 = scmp.lt.s32.totalorder %s1057_s16, 4 }
  0x28   : > { %p351_p10 = pnand %p879_p8, %p350_p9 }
  0x29   : > { %s357_s30 = sand.u32 (!%p351_p10), 1, %s1041_s12   ;;  %v1018_v32 = vld [vmem:[%s1267_s0 + $0x4] ss:$8 sps:$4 sm:$0xff] (!%p351_p10)   ;;  %v1016_v1 = vld [vmem:[%s1267_s0] ss:$8 sps:$4 sm:$0xff] (!%p351_p10)   ;;  %s882_s10 = sshll.u32 (!%p351_p10), %s1049_s14, 1  ;;  %v690_v2 = vlaneseq (!%p351_p10) }
  0x2a   : > { %354 = sbr.rel (%p351_p10) target bundleno = 337 (0x151), region = 66  ;;  %s880_s4 = sshll.u32 (!%p351_p10), %s357_s30, 8  ;;  %662 = vmatprep.mubr.bf16.mxu0 (!%p351_p10), %v1018_v32 }
  0x2b   : > { %s1203_s7 = scalar_lea.vmem (!%p351_p10), [#allocation3], %s880_s4  ;;  %p408_p11 = scmp.lt.s32.totalorder (!%p351_p10), %s882_s10, 5  ;;  %v691_v3 = vshrl.u32 (!%p351_p10), %v690_v2, 7 }
  0x2c   : > { %v968_v33 = vld [vmem:[%s1203_s7 + $0x4] ss:$8 sps:$4 sm:$0xff] (!%p351_p10)   ;;  %v970_v34 = vld [vmem:[%s1203_s7] ss:$8 sps:$4 sm:$0xff] (!%p351_p10)   ;;  %v971_v35 = vld [vmem:[%s1203_s7 + $0x14] ss:$8 sps:$4 sm:$0xff] (!%p351_p10)  }
  0x2d   : > { %630 = vmatprep.subr.bf16.mxu0 (!%p351_p10), %v968_v33  ;;  %v973_v36 = vld [vmem:[%s1203_s7 + $0x10] ss:$8 sps:$4 sm:$0xff] (!%p351_p10)   ;;  %v974_v37 = vld [vmem:[%s1203_s7 + $0x24] ss:$8 sps:$4 sm:$0xff] (!%p351_p10)   ;;  %v976_v38 = vld [vmem:[%s1203_s7 + $0x20] ss:$8 sps:$4 sm:$0xff] (!%p351_p10)  }
  0x2e   : > { %631 = vmatpush1.bf16.msra.mxu0 (!%p351_p10), %v970_v34  ;;  %v977_v39 = vld [vmem:[%s1203_s7 + $0x34] ss:$8 sps:$4 sm:$0xff] (!%p351_p10)   ;;  %v979_v40 = vld [vmem:[%s1203_s7 + $0x30] ss:$8 sps:$4 sm:$0xff] (!%p351_p10)   ;;  %v980_v41 = vld [vmem:[%s1203_s7 + $0x44] ss:$8 sps:$4 sm:$0xff] (!%p351_p10)  }
  0x2f   : > { %632 = vmatprep.subr.bf16.mxu0 (!%p351_p10), %v971_v35  ;;  %v982_v42 = vld [vmem:[%s1203_s7 + $0x40] ss:$8 sps:$4 sm:$0xff] (!%p351_p10)   ;;  %v983_v43 = vld [vmem:[%s1203_s7 + $0x54] ss:$8 sps:$4 sm:$0xff] (!%p351_p10)   ;;  %v985_v44 = vld [vmem:[%s1203_s7 + $0x50] ss:$8 sps:$4 sm:$0xff] (!%p351_p10)  }
  0x30   : > { %v986_v45 = vld [vmem:[%s1203_s7 + $0x64] ss:$8 sps:$4 sm:$0xff] (!%p351_p10)   ;;  %v988_v46 = vld [vmem:[%s1203_s7 + $0x60] ss:$8 sps:$4 sm:$0xff] (!%p351_p10)   ;;  %v989_v47 = vld [vmem:[%s1203_s7 + $0x74] ss:$8 sps:$4 sm:$0xff] (!%p351_p10)  }
  0x31   : > { %v991_v48 = vld [vmem:[%s1203_s7 + $0x70] ss:$8 sps:$4 sm:$0xff]   ;;  %v992_v49 = vld [vmem:[%s1203_s7 + $0x84] ss:$8 sps:$4 sm:$0xff]   ;;  %v994_v50 = vld [vmem:[%s1203_s7 + $0x80] ss:$8 sps:$4 sm:$0xff]  }
  0x32   : > { %633 = vmatpush1.bf16.msra.mxu0 %v973_v36  ;;  %v995_v51 = vld [vmem:[%s1203_s7 + $0x94] ss:$8 sps:$4 sm:$0xff]   ;;  %v997_v52 = vld [vmem:[%s1203_s7 + $0x90] ss:$8 sps:$4 sm:$0xff]   ;;  %v998_v53 = vld [vmem:[%s1203_s7 + $0xa4] ss:$8 sps:$4 sm:$0xff]  }
  0x33   : > { %634 = vmatprep.subr.bf16.mxu0 %v974_v37  ;;  %v1000_v54 = vld [vmem:[%s1203_s7 + $0xa0] ss:$8 sps:$4 sm:$0xff]   ;;  %v1001_v55 = vld [vmem:[%s1203_s7 + $0xb4] ss:$8 sps:$4 sm:$0xff]   ;;  %v1003_v56 = vld [vmem:[%s1203_s7 + $0xb0] ss:$8 sps:$4 sm:$0xff]  }
  0x34   : > { %v1004_v57 = vld [vmem:[%s1203_s7 + $0xc4] ss:$8 sps:$4 sm:$0xff]   ;;  %v1006_v58 = vld [vmem:[%s1203_s7 + $0xc0] ss:$8 sps:$4 sm:$0xff]   ;;  %v1007_v59 = vld [vmem:[%s1203_s7 + $0xd4] ss:$8 sps:$4 sm:$0xff]  }
  0x35   : > { %v1009_v60 = vld [vmem:[%s1203_s7 + $0xd0] ss:$8 sps:$4 sm:$0xff]   ;;  %v1010_v61 = vld [vmem:[%s1203_s7 + $0xe4] ss:$8 sps:$4 sm:$0xff]   ;;  %v1012_v62 = vld [vmem:[%s1203_s7 + $0xe0] ss:$8 sps:$4 sm:$0xff]  }
  0x36   : > { %635 = vmatpush1.bf16.msra.mxu0 %v976_v38  ;;  %v1013_v63 = vld [vmem:[%s1203_s7 + $0xf4] ss:$8 sps:$4 sm:$0xff]   ;;  %v1015_v0 = vld [vmem:[%s1203_s7 + $0xf0] ss:$8 sps:$4 sm:$0xff]   ;;  %s1279_s10 = smov (!%p408_p11, %s882_s10), 5  ;;  %v692_v4 = vsub.s32 0, %v691_v3 }
  0x37   : > { %636 = vmatprep.subr.bf16.mxu0 %v977_v39  ;;  %s410_s19 = scalar_lea.vmem %s1269_s2, %s1279_s10  ;;  %v696_v6 = vsub.s32 1, %v691_v3  ;;  %s881_s20 = sshll.u32 %s357_s30, 4 }
  0x38   : > { %v688_v5 = vld [vmem:[%s410_s19] sm:$0x3]  ;;  %s392_s23 = scalar_lea.vmem [#allocation4], %s881_s20  ;;  %s927_s24 = sshll.u32 (%p1114_p6), %s1049_s14, 3 }
  0x39   : > { %v693_v7 = vrot.slane %v688_v5, %v692_v4  ;;  %v697_v8 = vrot.slane %v688_v5, %v696_v6  ;;  %s730_s26 = scalar_lea.vmem (%p1114_p6), %s1270_s3, %s927_s24 }
  0x3a   : > { %637 = vmatpush1.bf16.msra.mxu0 %v979_v40 }
  0x3b   : > { %638 = vmatprep.subr.bf16.mxu0 %v980_v41 }
  0x3e   : > { %639 = vmatpush1.bf16.msra.mxu0 %v982_v42 }
  0x3f   : > { %640 = vmatprep.subr.bf16.mxu0 %v983_v43 }
  0x42   : > { %641 = vmatpush1.bf16.msra.mxu0 %v985_v44 }
  0x43   : > { %642 = vmatprep.subr.bf16.mxu0 %v986_v45 }
  0x46   : > { %643 = vmatpush1.bf16.msra.mxu0 %v988_v46 }
  0x47   : > { %644 = vmatprep.subr.bf16.mxu0 %v989_v47 }
  0x4a   : > { %645 = vmatpush1.bf16.msra.mxu0 %v991_v48 }
  0x4b   : > { %646 = vmatprep.subr.bf16.mxu0 %v992_v49 }
  0x4e   : > { %647 = vmatpush1.bf16.msra.mxu0 %v994_v50 }
  0x4f   : > { %648 = vmatprep.subr.bf16.mxu0 %v995_v51 }
  0x52   : > { %649 = vmatpush1.bf16.msra.mxu0 %v997_v52 }
  0x53   : > { %650 = vmatprep.subr.bf16.mxu0 %v998_v53 }
  0x56   : > { %651 = vmatpush1.bf16.msra.mxu0 %v1000_v54 }
  0x57   : > { %652 = vmatprep.subr.bf16.mxu0 %v1001_v55 }
  0x5a   : > { %653 = vmatpush1.bf16.msra.mxu0 %v1003_v56 }
  0x5b   : > { %654 = vmatprep.subr.bf16.mxu0 %v1004_v57 }
  0x5e   : > { %655 = vmatpush1.bf16.msra.mxu0 %v1006_v58 }
  0x5f   : > { %656 = vmatprep.subr.bf16.mxu0 %v1007_v59 }
  0x62   : > { %657 = vmatpush1.bf16.msra.mxu0 %v1009_v60 }
  0x63   : > { %658 = vmatprep.subr.bf16.mxu0 %v1010_v61 }
  0x66   : > { %659 = vmatpush1.bf16.msra.mxu0 %v1012_v62 }
  0x67   : > { %660 = vmatprep.subr.bf16.mxu0 %v1013_v63 }
  0x6a   : > { %661 = vmatpush1.bf16.msra.mxu0 %v1015_v0 }
  0x6d   : > { %663 = vmatmul.mubr.bf16.vlgmr.msra.gmra.mrb[0].mxu0 %v1016_v1 }
 0x140   : > { %v664_v9 = vpop.f32.mrb[0].mxu0 }
 0x141   : > { %v700_v10 = vadd.f32 %v693_v7, %v664_v9  ;;  %v666_v11 = vpop.f32.mrb[1].mxu0 }
 0x142   : > { %v701_v12 = vadd.f32 %v697_v8, %v666_v11  ;;  %v668_v13 = vpop.f32.mrb[2].mxu0  ;;  %724 = sbr.rel (!%p1114_p6) target bundleno = 337 (0x151), region = 82 }
 0x143   : > { %v702_v14 = vadd.f32 %v693_v7, %v668_v13  ;;  %v670_v15 = vpop.f32.mrb[3].mxu0 }
 0x144   : > { %v925_v16 = vpack.c.bf16 %v701_v12, %v700_v10  ;;  %v703_v17 = vadd.f32 %v697_v8, %v670_v15 }
 0x146   : > { %716 = vst [vmem:[%s392_s23] sm:$0xff] %v925_v16  ;;  %v926_v18 = vpack.c.bf16 %v703_v17, %v702_v14 }
 0x148   : > { %717 = vst [vmem:[%s392_s23 + $0x8] sm:$0xff] %v926_v18 }
 0x14d   : > { %v760_v19 = vld [vmem:[%s392_s23] sm:$0xff] }
 0x14e   : > { %761 = vst [vmem:[%s730_s26] sm:$0xff] %v760_v19 }
 0x14f   : > { %v762_v20 = vld [vmem:[%s392_s23 + $0x8] sm:$0xff] }
 0x150   : > { %763 = vst [vmem:[%s730_s26 + $0x18] sm:$0xff] %v762_v20 }
 0x151 PF: > { %s13_s16 = sadd.s32 1, %s1057_s16   ;;  %s1272_s12 = smov %s1045_s13 }
 0x152   : > { %p10_p12 = scmp.ge.s32.totalorder %s13_s16, 5   ;;  %s1273_s13 = smov %s1119_s22 }
 0x153   : > { %s1274_s14 = smov %s1053_s15  ;;  %s1275_s15 = smov %s1277_s17 }
 0x154   :  { %12 = sbr.rel (!%p10_p12) target bundleno = 3 (0x3), region = 157 }

// kernel: vit_forward.36
= control target key start
LH: loop header
LB: loop body
LE: loop exit
PB: predicated region body
PF: predicated region fallthrough
CT: control target
= control target key end

     0   :  { %s469_s12 = smov 0   ;;  %s501_s0 = inlined_call_operand.vmem [shape: bf16[8,8,64], index: 0, kind: input, shape index: {}]   ;;  %s502_s1 = inlined_call_operand.vmem [shape: bf16[8,8,64], index: 1, kind: input, shape index: {}]   ;;  %s503_s2 = inlined_call_operand.vmem [shape: bf16[8,8,64], index: 2, kind: input, shape index: {}]   ;;  %s504_s3 = inlined_call_operand.vmem [shape: bf16[8,8,64], index: 3, kind: output, shape index: {}]  }
   0x1 LB: > { %s396_s13 = sadd.s32 4294967295, %s445_s12   ;;  %p400_p0 = scmp.ge.s32.totalorder %s445_s12, 1  ;;  %s445_s12 = sphi %s469_s12, %s13_s12  }
   0x2   : > { %p154_p1 = scmp.lt.s32.totalorder %s445_s12, 9 }
   0x4   : > { %p155_p2 = pnand %p400_p0, %p154_p1 }
   0x5   : > { %p184_p3 = scmp.lt.s32.totalorder (!%p155_p2), %s396_s13, 7  ;;  %v447_v0 = vmov (!%p155_p2), 0.0   ;;  %vm448_vm0 = vmmov (!%p155_p2), 0   ;;  %vm204_vm1 = vcmask (!%p155_p2), 523264   ;;  %v252_v4 = vlaneseq (!%p155_p2) }
   0x6   : > { %158 = sbr.rel (%p155_p2) target bundleno = 771 (0x303), region = 32  ;;  %413 = vmatprep.subr.bf16.mxu0 (!%p155_p2), %v447_v0  ;;  %415 = vmatprep.mubr.msk.bf16.mxu0 (!%p155_p2), %vm448_vm0, %v447_v0  ;;  %vm256_vm3 = vcmask (!%p155_p2), 64512   ;;  %vm272_vm4 = vcmask (!%p155_p2), 1043456   ;;  %vm317_vm5 = vcmask (!%p155_p2), 519168  }
   0x7   : > { %419 = vmatprep.subr.bf16.mxu1 (!%p155_p2), %v447_v0  ;;  %421 = vmatprep.mubr.msk.bf16.mxu1 (!%p155_p2), %vm448_vm0, %v447_v0  ;;  %v253_v5 = vand.u32 (!%p155_p2), 127, %v252_v4 }
   0x9   : > { %vm254_vm2 = vcmp.lt.s32.totalorder (!%p155_p2), %v253_v5, 5 }
   0xd   : > { %s506_s13 = smov (!%p184_p3, %s396_s13), 7 }
   0xe   : > { %s477_s14 = sshll.u32 %s506_s13, 2 }
   0xf   : > { %s191_s17 = scalar_lea.vmem %s502_s1, %s477_s14  ;;  %s187_s20 = scalar_lea.vmem %s501_s0, %s477_s14 }
  0x10   : > { %v202_v1 = vld [vmem:[%s191_s17] sm:$0xf]  ;;  %s195_s23 = scalar_lea.vmem %s503_s2, %s477_s14  ;;  %s199_s26 = scalar_lea.vmem %s504_s3, %s477_s14 }
  0x11   : > { %v209_v2 = vsel %vm204_vm1, %v202_v1, 0  ;;  %v201_v3 = vld [vmem:[%s187_s20] sm:$0xf] }
  0x12   : > { %414 = vmatpush3.bf16.xpose.msra.mxu0 %v209_v2  ;;  %v203_v18 = vld [vmem:[%s195_s23] sm:$0xf] }
  0x13   : > { %v274_v19 = vsel %vm272_vm4, %v203_v18, 0 }
  0x14   : > { %420 = vmatpush3.bf16.msra.mxu1 %v274_v19 }
  0x19   : > { %416 = vmatmul.mubr.msk.bf16.vlgmr.msra.gmra.mrb[0].mxu0 %vm204_vm1, %v201_v3 }
  0xec   : > { %v245_v6 = vpop.f32.mrb[0].mxu0 }
  0xed   : > { %v251_v7 = vmul.f32 0.125, %v245_v6  ;;  %v417_v8 = vpop.f32.mrb[1].mxu0 }
  0xee   : > { %v248_v9 = vpop.f32.mrb[2].mxu0 }
  0xef   : > { %v418_v10 = vpop.f32.mrb[3].mxu0  ;;  %v255_v11 = vsel %vm254_vm2, %v251_v7, -1e+30 }
  0xf0   : > { %v257_v12 = vsel %vm256_vm3, %v255_v11, -inf }
  0xf1   : > { %258 = vmax.xlane.f32.xlu0 %v257_v12 }
 0x17e   : > { %v259_v13 = vpop.xlane.xlu0 %258 }
 0x17f   : > { %v260_v14 = vsub.f32 %v255_v11, %v259_v13 }
 0x181   : > { %v261_v15 = vmul.f32 1.442695, %v260_v14 }
 0x183   : > { %435 = vpow2.f32 %v261_v15 }
 0x18d   : > { %v436_v16 = vpop.eup %435 }
 0x18e   : > { %v263_v17 = vsel %vm256_vm3, %v436_v16, 0.0 }
 0x18f   : > { %264 = vadd.xlane.f32.xlu0 %v263_v17 }
 0x21c   : > { %v265_v20 = vpop.xlane.xlu0 %264 }
 0x21d   : > { %437 = vrcp.f32 %v265_v20 }
 0x227   : > { %v438_v21 = vpop.eup %437 }
 0x228   : > { %v267_v22 = vmul.f32 %v438_v21, %v436_v16 }
 0x22a   : > { %v268_v23 = vpack.c.bf16 %v267_v22, %v267_v22 }
 0x22c   : > { %422 = vmatmul.mubr.msk.bf16.vlgmr.msra.gmra.mrb[0].mxu1 %vm256_vm3, %v268_v23 }
 0x2ff   : > { %v310_v24 = vpop.f32.mrb[0].mxu1 }
 0x300   : > { %v316_v25 = vpack.c.bf16 %v310_v24, %v310_v24  ;;  %v423_v26 = vpop.f32.mrb[1].mxu1 }
 0x301   : > { %v313_v27 = vpop.f32.mrb[2].mxu1 }
 0x302   : > { %318 = vst.msk [vmem:[%s199_s26] sm:$0xf] %vm317_vm5, %v316_v25  ;;  %v424_v28 = vpop.f32.mrb[3].mxu1 }
 0x303 PF: > { %s13_s12 = sadd.s32 1, %s445_s12  }
 0x304   : > { %p10_p4 = scmp.ge.s32.totalorder %s13_s12, 10  }
 0x306   :  { %12 = sbr.rel (!%p10_p4) target bundleno = 1 (0x1), region = 68 }

// kernel: vit_forward.37
= control target key start
LH: loop header
LB: loop body
LE: loop exit
PB: predicated region body
PF: predicated region fallthrough
CT: control target
= control target key end

     0   :  { %v293_v34 = vlaneseq  ;;  %s566_s1 = inlined_call_operand.vmem [shape: bf16[256,256], index: 1, kind: input, shape index: {}]   ;;  %s567_s0 = inlined_call_operand.vmem [shape: bf16[16,256], index: 0, kind: input, shape index: {}]   ;;  %s568_s2 = inlined_call_operand.vmem [shape: f32[1,256], index: 2, kind: input, shape index: {}]   ;;  %s569_s3 = inlined_call_operand.vmem [shape: bf16[16,256], index: 3, kind: input, shape index: {}]   ;;  %s570_s4 = inlined_call_operand.vmem [shape: bf16[16,256], index: 4, kind: output, shape index: {}]  }
   0x1   :  { %v373_v0 = vld [vmem:[%s566_s1 + $0x4] ss:$8 sps:$4 sm:$0xff]   ;;  %v375_v1 = vld [vmem:[%s566_s1] ss:$8 sps:$4 sm:$0xff]   ;;  %v376_v2 = vld [vmem:[%s566_s1 + $0x14] ss:$8 sps:$4 sm:$0xff]  }
   0x2   :  { %233 = vmatprep.subr.bf16.mxu0 %v373_v0  ;;  %v378_v3 = vld [vmem:[%s566_s1 + $0x10] ss:$8 sps:$4 sm:$0xff]   ;;  %v379_v4 = vld [vmem:[%s566_s1 + $0x24] ss:$8 sps:$4 sm:$0xff]   ;;  %v381_v5 = vld [vmem:[%s566_s1 + $0x20] ss:$8 sps:$4 sm:$0xff]  }
   0x3   :  { %234 = vmatpush1.bf16.msra.mxu0 %v375_v1  ;;  %v382_v6 = vld [vmem:[%s566_s1 + $0x34] ss:$8 sps:$4 sm:$0xff]   ;;  %v384_v7 = vld [vmem:[%s566_s1 + $0x30] ss:$8 sps:$4 sm:$0xff]   ;;  %v385_v8 = vld [vmem:[%s566_s1 + $0x44] ss:$8 sps:$4 sm:$0xff]  }
   0x4   :  { %235 = vmatprep.subr.bf16.mxu0 %v376_v2  ;;  %v387_v9 = vld [vmem:[%s566_s1 + $0x40] ss:$8 sps:$4 sm:$0xff]   ;;  %v388_v10 = vld [vmem:[%s566_s1 + $0x54] ss:$8 sps:$4 sm:$0xff]   ;;  %v390_v11 = vld [vmem:[%s566_s1 + $0x50] ss:$8 sps:$4 sm:$0xff]  }
   0x5   :  { %v391_v12 = vld [vmem:[%s566_s1 + $0x64] ss:$8 sps:$4 sm:$0xff]   ;;  %v393_v14 = vld [vmem:[%s566_s1 + $0x60] ss:$8 sps:$4 sm:$0xff]   ;;  %v394_v15 = vld [vmem:[%s566_s1 + $0x74] ss:$8 sps:$4 sm:$0xff]  }
   0x6   :  { %v423_v13 = vld [vmem:[%s567_s0 + $0x4] ss:$8 sps:$4 sm:$0xff]   ;;  %v396_v16 = vld [vmem:[%s566_s1 + $0x70] ss:$8 sps:$4 sm:$0xff]   ;;  %v399_v18 = vld [vmem:[%s566_s1 + $0x80] ss:$8 sps:$4 sm:$0xff]  }
   0x7   :  { %236 = vmatpush1.bf16.msra.mxu0 %v378_v3  ;;  %265 = vmatprep.mubr.bf16.mxu0 %v423_v13  ;;  %v397_v17 = vld [vmem:[%s566_s1 + $0x84] ss:$8 sps:$4 sm:$0xff]   ;;  %v400_v19 = vld [vmem:[%s566_s1 + $0x94] ss:$8 sps:$4 sm:$0xff]   ;;  %v402_v20 = vld [vmem:[%s566_s1 + $0x90] ss:$8 sps:$4 sm:$0xff]  }
   0x8   :  { %237 = vmatprep.subr.bf16.mxu0 %v379_v4  ;;  %v403_v21 = vld [vmem:[%s566_s1 + $0xa4] ss:$8 sps:$4 sm:$0xff]   ;;  %v405_v22 = vld [vmem:[%s566_s1 + $0xa0] ss:$8 sps:$4 sm:$0xff]   ;;  %v406_v23 = vld [vmem:[%s566_s1 + $0xb4] ss:$8 sps:$4 sm:$0xff]  }
   0x9   :  { %v408_v24 = vld [vmem:[%s566_s1 + $0xb0] ss:$8 sps:$4 sm:$0xff]   ;;  %v409_v25 = vld [vmem:[%s566_s1 + $0xc4] ss:$8 sps:$4 sm:$0xff]   ;;  %v411_v26 = vld [vmem:[%s566_s1 + $0xc0] ss:$8 sps:$4 sm:$0xff]  }
   0xa   :  { %v412_v27 = vld [vmem:[%s566_s1 + $0xd4] ss:$8 sps:$4 sm:$0xff]   ;;  %v414_v28 = vld [vmem:[%s566_s1 + $0xd0] ss:$8 sps:$4 sm:$0xff]   ;;  %v415_v29 = vld [vmem:[%s566_s1 + $0xe4] ss:$8 sps:$4 sm:$0xff]  }
   0xb   :  { %238 = vmatpush1.bf16.msra.mxu0 %v381_v5  ;;  %v417_v30 = vld [vmem:[%s566_s1 + $0xe0] ss:$8 sps:$4 sm:$0xff]   ;;  %v418_v31 = vld [vmem:[%s566_s1 + $0xf4] ss:$8 sps:$4 sm:$0xff]   ;;  %v420_v32 = vld [vmem:[%s566_s1 + $0xf0] ss:$8 sps:$4 sm:$0xff]  }
   0xc   :  { %239 = vmatprep.subr.bf16.mxu0 %v382_v6  ;;  %v421_v33 = vld [vmem:[%s567_s0] ss:$8 sps:$4 sm:$0xff]   ;;  %v294_v35 = vshrl.u32 %v293_v34, 7 }
   0xd   :  { %v291_v37 = vld [vmem:[%s568_s2] sm:$0x3]  ;;  %v308_v42 = vld [vmem:[%s569_s3 + $0x8] sm:$0xff] }
   0xe   :  { %v295_v36 = vsub.s32 0, %v294_v35  ;;  %v299_v38 = vsub.s32 1, %v294_v35  ;;  %v307_v39 = vld [vmem:[%s569_s3] sm:$0xff]  ;;  %v311_v48 = vunpack.c.l.bf16 %v308_v42  ;;  %v312_v51 = vunpack.c.h.bf16 %v308_v42 }
   0xf   :  { %240 = vmatpush1.bf16.msra.mxu0 %v384_v7  ;;  %v309_v43 = vunpack.c.l.bf16 %v307_v39  ;;  %v310_v45 = vunpack.c.h.bf16 %v307_v39 }
  0x10   :  { %241 = vmatprep.subr.bf16.mxu0 %v385_v8  ;;  %v296_v40 = vrot.slane %v291_v37, %v295_v36  ;;  %v300_v41 = vrot.slane %v291_v37, %v299_v38 }
  0x13   :  { %242 = vmatpush1.bf16.msra.mxu0 %v387_v9 }
  0x14   :  { %243 = vmatprep.subr.bf16.mxu0 %v388_v10 }
  0x17   :  { %244 = vmatpush1.bf16.msra.mxu0 %v390_v11 }
  0x18   :  { %245 = vmatprep.subr.bf16.mxu0 %v391_v12 }
  0x1b   :  { %246 = vmatpush1.bf16.msra.mxu0 %v393_v14 }
  0x1c   :  { %247 = vmatprep.subr.bf16.mxu0 %v394_v15 }
  0x1f   :  { %248 = vmatpush1.bf16.msra.mxu0 %v396_v16 }
  0x20   :  { %249 = vmatprep.subr.bf16.mxu0 %v397_v17 }
  0x23   :  { %250 = vmatpush1.bf16.msra.mxu0 %v399_v18 }
  0x24   :  { %251 = vmatprep.subr.bf16.mxu0 %v400_v19 }
  0x27   :  { %252 = vmatpush1.bf16.msra.mxu0 %v402_v20 }
  0x28   :  { %253 = vmatprep.subr.bf16.mxu0 %v403_v21 }
  0x2b   :  { %254 = vmatpush1.bf16.msra.mxu0 %v405_v22 }
  0x2c   :  { %255 = vmatprep.subr.bf16.mxu0 %v406_v23 }
  0x2f   :  { %256 = vmatpush1.bf16.msra.mxu0 %v408_v24 }
  0x30   :  { %257 = vmatprep.subr.bf16.mxu0 %v409_v25 }
  0x33   :  { %258 = vmatpush1.bf16.msra.mxu0 %v411_v26 }
  0x34   :  { %259 = vmatprep.subr.bf16.mxu0 %v412_v27 }
  0x37   :  { %260 = vmatpush1.bf16.msra.mxu0 %v414_v28 }
  0x38   :  { %261 = vmatprep.subr.bf16.mxu0 %v415_v29 }
  0x3b   :  { %262 = vmatpush1.bf16.msra.mxu0 %v417_v30 }
  0x3c   :  { %263 = vmatprep.subr.bf16.mxu0 %v418_v31 }
  0x3f   :  { %264 = vmatpush1.bf16.msra.mxu0 %v420_v32 }
  0x42   :  { %266 = vmatmul.mubr.bf16.vlgmr.msra.gmra.mrb[0].mxu0 %v421_v33 }
 0x115   :  { %v267_v44 = vpop.f32.mrb[0].mxu0 }
 0x116   :  { %v303_v46 = vadd.f32 %v296_v40, %v267_v44  ;;  %v269_v47 = vpop.f32.mrb[1].mxu0 }
 0x117   :  { %v304_v49 = vadd.f32 %v300_v41, %v269_v47  ;;  %v271_v50 = vpop.f32.mrb[2].mxu0 }
 0x118   :  { %v313_v52 = vadd.f32 %v309_v43, %v303_v46  ;;  %v305_v53 = vadd.f32 %v296_v40, %v271_v50  ;;  %v273_v54 = vpop.f32.mrb[3].mxu0 }
 0x119   :  { %v314_v55 = vadd.f32 %v310_v45, %v304_v49  ;;  %v306_v56 = vadd.f32 %v300_v41, %v273_v54 }
 0x11a   :  { %v315_v57 = vadd.f32 %v311_v48, %v305_v53 }
 0x11b   :  { %v371_v58 = vpack.c.bf16 %v314_v55, %v313_v52  ;;  %v316_v59 = vadd.f32 %v312_v51, %v306_v56 }
 0x11d   :  { %329 = vst [vmem:[%s570_s4] sm:$0xff] %v371_v58  ;;  %v372_v60 = vpack.c.bf16 %v316_v59, %v315_v57 }
 0x11f   :  { %330 = vst [vmem:[%s570_s4 + $0x8] sm:$0xff] %v372_v60 }

// kernel: vit_forward.39
= control target key start
LH: loop header
LB: loop body
LE: loop exit
PB: predicated region body
PF: predicated region fallthrough
CT: control target
= control target key end

     0   :  { %s1123_s12 = smov 0   ;;  %s1125_s13 = smov 0   ;;  %s1311_s0 = inlined_call_operand.vmem [shape: bf16[16,256], index: 0, kind: input, shape index: {}]   ;;  %s1312_s1 = inlined_call_operand.vmem [shape: bf16[256,1024], index: 1, kind: input, shape index: {}]   ;;  %s1313_s2 = inlined_call_operand.vmem [shape: f32[1,1024], index: 2, kind: input, shape index: {}]   ;;  %s1314_s3 = inlined_call_operand.vmem [shape: bf16[16,1024], index: 3, kind: output, shape index: {}]  }
   0x1   :  { %s1127_s14 = smov 0   ;;  %s1129_s15 = smov 0  }
   0x2   :  { %s1131_s16 = smov 0  }
   0x3 LB: > { %s28_s17 = sadd.s32 1, %s1097_s15  ;;  %s907_s18 = sadd.s32 4294967295, %s1101_s16   ;;  %s1101_s16 = sphi %s1131_s16, %s13_s16   ;;  %s1097_s15 = sphi %s1129_s15, %s1319_s15   ;;  %s1093_s14 = sphi %s1127_s14, %s1318_s14   ;;  %s1089_s13 = sphi %s1125_s13, %s1317_s13   ;;  %s1085_s12 = sphi %s1123_s12, %s1316_s12  }
   0x4   : > { %p30_p0 = scmp.ge.s32.totalorder %s28_s17, 4  ;;  %p76_p1 = scmp.ne.s32.totalorder %s1089_s13, %s1085_s12 }
   0x5   : > { %p77_p2 = scmp.eq.s32.totalorder %s1101_s16, 0  ;;  %p134_p4 = scmp.eq.s32.totalorder %s907_s18, 3 }
   0x6   : > { %s1321_s17 = smov (%p30_p0, %s28_s17), 0  ;;  %s69_s20 = sadd.s32 1, %s1089_s13 }
   0x7   : > { %p78_p3 = por %p77_p2, %p76_p1  ;;  %s65_s19 = ssub.s32 %s1097_s15, %s1321_s17 }
   0x8   : > { %p67_p5 = scmp.eq.s32.totalorder %s65_s19, 0  ;;  %p1158_p6 = por %p134_p4, %p76_p1 }
   0x9   : > { %p911_p7 = scmp.ge.s32.totalorder %s1101_s16, 4 }
   0xa   : > { %s1163_s22 = scalar_select %p67_p5, %s1089_s13, %s69_s20  }
   0xb   : > { %171 = sbr.rel (%p911_p7) target bundleno = 54 (0x36), region = 20 }
  0x12   : > { %174 = sbr.rel (!%p78_p3) target bundleno = 54 (0x36), region = 24  ;;  %s176_s23 = sand.u32 (%p78_p3), 1, %s1089_s13  }
  0x13   : > { %s960_s24 = sshll.u32 (%p78_p3), %s1097_s15, 3  ;;  %s912_s25 = sshll.u32 (%p78_p3), %s176_s23, 8 }
  0x14   : > { %s1171_s28 = scalar_lea.vmem (%p78_p3), %s1312_s1, %s960_s24  ;;  %s1176_s29 = scalar_lea.vmem (%p78_p3), [#allocation3], %s912_s25 }
  0x15   : > { %v274_v0 = vld [vmem:[%s1171_s28] sm:$0xff] (%p78_p3) }
  0x16   : > { %v276_v1 = vld [vmem:[%s1171_s28 + $0x20] sm:$0xff] (%p78_p3)  ;;  %275 = vst [vmem:[%s1176_s29] sm:$0xff] (%p78_p3), %v274_v0 }
  0x17   : > { %v278_v2 = vld [vmem:[%s1171_s28 + $0x40] sm:$0xff] (%p78_p3)  ;;  %277 = vst [vmem:[%s1176_s29 + $0x8] sm:$0xff] (%p78_p3), %v276_v1 }
  0x18   : > { %279 = vst [vmem:[%s1176_s29 + $0x10] sm:$0xff] (%p78_p3), %v278_v2  ;;  %v280_v3 = vld [vmem:[%s1171_s28 + $0x60] sm:$0xff] (%p78_p3) }
  0x19   : > { %v282_v4 = vld [vmem:[%s1171_s28 + $0x80] sm:$0xff]  ;;  %281 = vst [vmem:[%s1176_s29 + $0x18] sm:$0xff] %v280_v3 }
  0x1a   : > { %v284_v5 = vld [vmem:[%s1171_s28 + $0xa0] sm:$0xff]  ;;  %283 = vst [vmem:[%s1176_s29 + $0x20] sm:$0xff] %v282_v4 }
  0x1b   : > { %285 = vst [vmem:[%s1176_s29 + $0x28] sm:$0xff] %v284_v5  ;;  %v286_v6 = vld [vmem:[%s1171_s28 + $0xc0] sm:$0xff] }
  0x1c   : > { %v288_v7 = vld [vmem:[%s1171_s28 + $0xe0] sm:$0xff]  ;;  %287 = vst [vmem:[%s1176_s29 + $0x30] sm:$0xff] %v286_v6 }
  0x1d   : > { %v290_v8 = vld [vmem:[%s1171_s28 + $0x100] sm:$0xff]  ;;  %289 = vst [vmem:[%s1176_s29 + $0x38] sm:$0xff] %v288_v7 }
  0x1e   : > { %291 = vst [vmem:[%s1176_s29 + $0x40] sm:$0xff] %v290_v8  ;;  %v292_v9 = vld [vmem:[%s1171_s28 + $0x120] sm:$0xff] }
  0x1f   : > { %v294_v10 = vld [vmem:[%s1171_s28 + $0x140] sm:$0xff]  ;;  %293 = vst [vmem:[%s1176_s29 + $0x48] sm:$0xff] %v292_v9 }
  0x20   : > { %v296_v11 = vld [vmem:[%s1171_s28 + $0x160] sm:$0xff]  ;;  %295 = vst [vmem:[%s1176_s29 + $0x50] sm:$0xff] %v294_v10 }
  0x21   : > { %297 = vst [vmem:[%s1176_s29 + $0x58] sm:$0xff] %v296_v11  ;;  %v298_v12 = vld [vmem:[%s1171_s28 + $0x180] sm:$0xff] }
  0x22   : > { %v300_v13 = vld [vmem:[%s1171_s28 + $0x1a0] sm:$0xff]  ;;  %299 = vst [vmem:[%s1176_s29 + $0x60] sm:$0xff] %v298_v12 }
  0x23   : > { %v302_v14 = vld [vmem:[%s1171_s28 + $0x1c0] sm:$0xff]  ;;  %301 = vst [vmem:[%s1176_s29 + $0x68] sm:$0xff] %v300_v13 }
  0x24   : > { %303 = vst [vmem:[%s1176_s29 + $0x70] sm:$0xff] %v302_v14  ;;  %v304_v15 = vld [vmem:[%s1171_s28 + $0x1e0] sm:$0xff] }
  0x25   : > { %v306_v16 = vld [vmem:[%s1171_s28 + $0x200] sm:$0xff]  ;;  %305 = vst [vmem:[%s1176_s29 + $0x78] sm:$0xff] %v304_v15 }
  0x26   : > { %v308_v17 = vld [vmem:[%s1171_s28 + $0x220] sm:$0xff]  ;;  %307 = vst [vmem:[%s1176_s29 + $0x80] sm:$0xff] %v306_v16 }
  0x27   : > { %309 = vst [vmem:[%s1176_s29 + $0x88] sm:$0xff] %v308_v17  ;;  %v310_v18 = vld [vmem:[%s1171_s28 + $0x240] sm:$0xff] }
  0x28   : > { %v312_v19 = vld [vmem:[%s1171_s28 + $0x260] sm:$0xff]  ;;  %311 = vst [vmem:[%s1176_s29 + $0x90] sm:$0xff] %v310_v18 }
  0x29   : > { %v314_v20 = vld [vmem:[%s1171_s28 + $0x280] sm:$0xff]  ;;  %313 = vst [vmem:[%s1176_s29 + $0x98] sm:$0xff] %v312_v19 }
  0x2a   : > { %315 = vst [vmem:[%s1176_s29 + $0xa0] sm:$0xff] %v314_v20  ;;  %v316_v21 = vld [vmem:[%s1171_s28 + $0x2a0] sm:$0xff] }
  0x2b   : > { %v318_v22 = vld [vmem:[%s1171_s28 + $0x2c0] sm:$0xff]  ;;  %317 = vst [vmem:[%s1176_s29 + $0xa8] sm:$0xff] %v316_v21 }
  0x2c   : > { %v320_v23 = vld [vmem:[%s1171_s28 + $0x2e0] sm:$0xff]  ;;  %319 = vst [vmem:[%s1176_s29 + $0xb0] sm:$0xff] %v318_v22 }
  0x2d   : > { %321 = vst [vmem:[%s1176_s29 + $0xb8] sm:$0xff] %v320_v23  ;;  %v322_v24 = vld [vmem:[%s1171_s28 + $0x300] sm:$0xff] }
  0x2e   : > { %v324_v25 = vld [vmem:[%s1171_s28 + $0x320] sm:$0xff]  ;;  %323 = vst [vmem:[%s1176_s29 + $0xc0] sm:$0xff] %v322_v24 }
  0x2f   : > { %v326_v26 = vld [vmem:[%s1171_s28 + $0x340] sm:$0xff]  ;;  %325 = vst [vmem:[%s1176_s29 + $0xc8] sm:$0xff] %v324_v25 }
  0x30   : > { %327 = vst [vmem:[%s1176_s29 + $0xd0] sm:$0xff] %v326_v26  ;;  %v328_v27 = vld [vmem:[%s1171_s28 + $0x360] sm:$0xff] }
  0x31   : > { %v330_v28 = vld [vmem:[%s1171_s28 + $0x380] sm:$0xff]  ;;  %329 = vst [vmem:[%s1176_s29 + $0xd8] sm:$0xff] %v328_v27 }
  0x32   : > { %v332_v29 = vld [vmem:[%s1171_s28 + $0x3a0] sm:$0xff]  ;;  %331 = vst [vmem:[%s1176_s29 + $0xe0] sm:$0xff] %v330_v28 }
  0x33   : > { %333 = vst [vmem:[%s1176_s29 + $0xe8] sm:$0xff] %v332_v29  ;;  %v334_v30 = vld [vmem:[%s1171_s28 + $0x3c0] sm:$0xff] }
  0x34   : > { %v336_v31 = vld [vmem:[%s1171_s28 + $0x3e0] sm:$0xff]  ;;  %335 = vst [vmem:[%s1176_s29 + $0xf0] sm:$0xff] %v334_v30 }
  0x35   : > { %337 = vst [vmem:[%s1176_s29 + $0xf8] sm:$0xff] %v336_v31 }
  0x36 PF: > { %p915_p8 = scmp.ge.s32.totalorder %s1101_s16, 1  ;;  %p350_p9 = scmp.lt.s32.totalorder %s1101_s16, 5 }
  0x38   : > { %p351_p10 = pnand %p915_p8, %p350_p9 }
  0x39   : > { %s357_s30 = sand.u32 (!%p351_p10), 1, %s1085_s12   ;;  %v1054_v32 = vld [vmem:[%s1311_s0 + $0x4] ss:$8 sps:$4 sm:$0xff] (!%p351_p10)   ;;  %v1052_v1 = vld [vmem:[%s1311_s0] ss:$8 sps:$4 sm:$0xff] (!%p351_p10)   ;;  %s918_s10 = sshll.u32 (!%p351_p10), %s1093_s14, 1  ;;  %v690_v2 = vlaneseq (!%p351_p10) }
  0x3a   : > { %354 = sbr.rel (%p351_p10) target bundleno = 378 (0x17a), region = 66  ;;  %s916_s4 = sshll.u32 (!%p351_p10), %s357_s30, 8  ;;  %662 = vmatprep.mubr.bf16.mxu0 (!%p351_p10), %v1054_v32 }
  0x3b   : > { %s1247_s7 = scalar_lea.vmem (!%p351_p10), [#allocation3], %s916_s4  ;;  %p408_p11 = scmp.lt.s32.totalorder (!%p351_p10), %s918_s10, 7  ;;  %v691_v3 = vshrl.u32 (!%p351_p10), %v690_v2, 7 }
  0x3c   : > { %v1004_v33 = vld [vmem:[%s1247_s7 + $0x4] ss:$8 sps:$4 sm:$0xff] (!%p351_p10)   ;;  %v1006_v34 = vld [vmem:[%s1247_s7] ss:$8 sps:$4 sm:$0xff] (!%p351_p10)   ;;  %v1007_v35 = vld [vmem:[%s1247_s7 + $0x14] ss:$8 sps:$4 sm:$0xff] (!%p351_p10)  }
  0x3d   : > { %630 = vmatprep.subr.bf16.mxu0 (!%p351_p10), %v1004_v33  ;;  %v1009_v36 = vld [vmem:[%s1247_s7 + $0x10] ss:$8 sps:$4 sm:$0xff] (!%p351_p10)   ;;  %v1010_v37 = vld [vmem:[%s1247_s7 + $0x24] ss:$8 sps:$4 sm:$0xff] (!%p351_p10)   ;;  %v1012_v38 = vld [vmem:[%s1247_s7 + $0x20] ss:$8 sps:$4 sm:$0xff] (!%p351_p10)  }
  0x3e   : > { %631 = vmatpush1.bf16.msra.mxu0 (!%p351_p10), %v1006_v34  ;;  %v1013_v39 = vld [vmem:[%s1247_s7 + $0x34] ss:$8 sps:$4 sm:$0xff] (!%p351_p10)   ;;  %v1015_v40 = vld [vmem:[%s1247_s7 + $0x30] ss:$8 sps:$4 sm:$0xff] (!%p351_p10)   ;;  %v1016_v41 = vld [vmem:[%s1247_s7 + $0x44] ss:$8 sps:$4 sm:$0xff] (!%p351_p10)  }
  0x3f   : > { %632 = vmatprep.subr.bf16.mxu0 (!%p351_p10), %v1007_v35  ;;  %v1018_v42 = vld [vmem:[%s1247_s7 + $0x40] ss:$8 sps:$4 sm:$0xff] (!%p351_p10)   ;;  %v1019_v43 = vld [vmem:[%s1247_s7 + $0x54] ss:$8 sps:$4 sm:$0xff] (!%p351_p10)   ;;  %v1021_v44 = vld [vmem:[%s1247_s7 + $0x50] ss:$8 sps:$4 sm:$0xff] (!%p351_p10)  }
  0x40   : > { %v1022_v45 = vld [vmem:[%s1247_s7 + $0x64] ss:$8 sps:$4 sm:$0xff] (!%p351_p10)   ;;  %v1024_v46 = vld [vmem:[%s1247_s7 + $0x60] ss:$8 sps:$4 sm:$0xff] (!%p351_p10)   ;;  %v1025_v47 = vld [vmem:[%s1247_s7 + $0x74] ss:$8 sps:$4 sm:$0xff] (!%p351_p10)  }
  0x41   : > { %v1027_v48 = vld [vmem:[%s1247_s7 + $0x70] ss:$8 sps:$4 sm:$0xff]   ;;  %v1028_v49 = vld [vmem:[%s1247_s7 + $0x84] ss:$8 sps:$4 sm:$0xff]   ;;  %v1030_v50 = vld [vmem:[%s1247_s7 + $0x80] ss:$8 sps:$4 sm:$0xff]  }
  0x42   : > { %633 = vmatpush1.bf16.msra.mxu0 %v1009_v36  ;;  %v1031_v51 = vld [vmem:[%s1247_s7 + $0x94] ss:$8 sps:$4 sm:$0xff]   ;;  %v1033_v52 = vld [vmem:[%s1247_s7 + $0x90] ss:$8 sps:$4 sm:$0xff]   ;;  %v1034_v53 = vld [vmem:[%s1247_s7 + $0xa4] ss:$8 sps:$4 sm:$0xff]  }
  0x43   : > { %634 = vmatprep.subr.bf16.mxu0 %v1010_v37  ;;  %v1036_v54 = vld [vmem:[%s1247_s7 + $0xa0] ss:$8 sps:$4 sm:$0xff]   ;;  %v1037_v55 = vld [vmem:[%s1247_s7 + $0xb4] ss:$8 sps:$4 sm:$0xff]   ;;  %v1039_v56 = vld [vmem:[%s1247_s7 + $0xb0] ss:$8 sps:$4 sm:$0xff]  }
  0x44   : > { %v1040_v57 = vld [vmem:[%s1247_s7 + $0xc4] ss:$8 sps:$4 sm:$0xff]   ;;  %v1042_v58 = vld [vmem:[%s1247_s7 + $0xc0] ss:$8 sps:$4 sm:$0xff]   ;;  %v1043_v59 = vld [vmem:[%s1247_s7 + $0xd4] ss:$8 sps:$4 sm:$0xff]  }
  0x45   : > { %v1045_v60 = vld [vmem:[%s1247_s7 + $0xd0] ss:$8 sps:$4 sm:$0xff]   ;;  %v1046_v61 = vld [vmem:[%s1247_s7 + $0xe4] ss:$8 sps:$4 sm:$0xff]   ;;  %v1048_v62 = vld [vmem:[%s1247_s7 + $0xe0] ss:$8 sps:$4 sm:$0xff]  }
  0x46   : > { %635 = vmatpush1.bf16.msra.mxu0 %v1012_v38  ;;  %v1049_v63 = vld [vmem:[%s1247_s7 + $0xf4] ss:$8 sps:$4 sm:$0xff]   ;;  %v1051_v0 = vld [vmem:[%s1247_s7 + $0xf0] ss:$8 sps:$4 sm:$0xff]   ;;  %s1323_s10 = smov (!%p408_p11, %s918_s10), 7  ;;  %v692_v4 = vsub.s32 0, %v691_v3 }
  0x47   : > { %636 = vmatprep.subr.bf16.mxu0 %v1013_v39  ;;  %s410_s19 = scalar_lea.vmem %s1313_s2, %s1323_s10  ;;  %v696_v6 = vsub.s32 1, %v691_v3  ;;  %s917_s20 = sshll.u32 %s357_s30, 4 }
  0x48   : > { %v688_v5 = vld [vmem:[%s410_s19] sm:$0x3]  ;;  %s392_s23 = scalar_lea.vmem [#allocation4], %s917_s20  ;;  %s963_s12 = sshll.u32 (%p1158_p6), %s1093_s14, 3 }
  0x49   : > { %v693_v7 = vrot.slane %v688_v5, %v692_v4  ;;  %v697_v8 = vrot.slane %v688_v5, %v696_v6  ;;  %s766_s26 = scalar_lea.vmem (%p1158_p6), %s1314_s3, %s963_s12 }
  0x4a   : > { %637 = vmatpush1.bf16.msra.mxu0 %v1015_v40 }
  0x4b   : > { %638 = vmatprep.subr.bf16.mxu0 %v1016_v41 }
  0x4e   : > { %639 = vmatpush1.bf16.msra.mxu0 %v1018_v42 }
  0x4f   : > { %640 = vmatprep.subr.bf16.mxu0 %v1019_v43 }
  0x52   : > { %641 = vmatpush1.bf16.msra.mxu0 %v1021_v44 }
  0x53   : > { %642 = vmatprep.subr.bf16.mxu0 %v1022_v45 }
  0x56   : > { %643 = vmatpush1.bf16.msra.mxu0 %v1024_v46 }
  0x57   : > { %644 = vmatprep.subr.bf16.mxu0 %v1025_v47 }
  0x5a   : > { %645 = vmatpush1.bf16.msra.mxu0 %v1027_v48 }
  0x5b   : > { %646 = vmatprep.subr.bf16.mxu0 %v1028_v49 }
  0x5e   : > { %647 = vmatpush1.bf16.msra.mxu0 %v1030_v50 }
  0x5f   : > { %648 = vmatprep.subr.bf16.mxu0 %v1031_v51 }
  0x62   : > { %649 = vmatpush1.bf16.msra.mxu0 %v1033_v52 }
  0x63   : > { %650 = vmatprep.subr.bf16.mxu0 %v1034_v53 }
  0x66   : > { %651 = vmatpush1.bf16.msra.mxu0 %v1036_v54 }
  0x67   : > { %652 = vmatprep.subr.bf16.mxu0 %v1037_v55 }
  0x6a   : > { %653 = vmatpush1.bf16.msra.mxu0 %v1039_v56 }
  0x6b   : > { %654 = vmatprep.subr.bf16.mxu0 %v1040_v57 }
  0x6e   : > { %655 = vmatpush1.bf16.msra.mxu0 %v1042_v58 }
  0x6f   : > { %656 = vmatprep.subr.bf16.mxu0 %v1043_v59 }
  0x72   : > { %657 = vmatpush1.bf16.msra.mxu0 %v1045_v60 }
  0x73   : > { %658 = vmatprep.subr.bf16.mxu0 %v1046_v61 }
  0x76   : > { %659 = vmatpush1.bf16.msra.mxu0 %v1048_v62 }
  0x77   : > { %660 = vmatprep.subr.bf16.mxu0 %v1049_v63 }
  0x7a   : > { %661 = vmatpush1.bf16.msra.mxu0 %v1051_v0 }
  0x7d   : > { %663 = vmatmul.mubr.bf16.vlgmr.msra.gmra.mrb[0].mxu0 %v1052_v1 }
 0x150   : > { %v664_v9 = vpop.f32.mrb[0].mxu0 }
 0x151   : > { %v700_v10 = vadd.f32 %v693_v7, %v664_v9  ;;  %v666_v11 = vpop.f32.mrb[1].mxu0 }
 0x152   : > { %v701_v12 = vadd.f32 %v697_v8, %v666_v11  ;;  %v668_v13 = vpop.f32.mrb[2].mxu0 }
 0x153   : > { %v708_v14 = vmul.f32 0.044715, %v700_v10  ;;  %v702_v15 = vadd.f32 %v693_v7, %v668_v13  ;;  %v670_v16 = vpop.f32.mrb[3].mxu0  ;;  %v704_v39 = vmul.f32 0.5, %v700_v10 }
 0x154   : > { %v709_v17 = vmul.f32 0.044715, %v701_v12  ;;  %v703_v18 = vadd.f32 %v697_v8, %v670_v16  ;;  %v705_v42 = vmul.f32 0.5, %v701_v12 }
 0x155   : > { %v712_v19 = vmul.f32 %v708_v14, %v700_v10  ;;  %v710_v20 = vmul.f32 0.044715, %v702_v15  ;;  %v706_v46 = vmul.f32 0.5, %v702_v15 }
 0x156   : > { %v713_v21 = vmul.f32 %v709_v17, %v701_v12  ;;  %v711_v22 = vmul.f32 0.044715, %v703_v18  ;;  %v707_v49 = vmul.f32 0.5, %v703_v18 }
 0x157   : > { %v716_v23 = vmul.f32 %v712_v19, %v700_v10  ;;  %v714_v24 = vmul.f32 %v710_v20, %v702_v15 }
 0x158   : > { %v717_v25 = vmul.f32 %v713_v21, %v701_v12  ;;  %v715_v26 = vmul.f32 %v711_v22, %v703_v18 }
 0x159   : > { %v720_v27 = vadd.f32 %v716_v23, %v700_v10  ;;  %v718_v28 = vmul.f32 %v714_v24, %v702_v15 }
 0x15a   : > { %v721_v29 = vadd.f32 %v717_v25, %v701_v12  ;;  %v719_v30 = vmul.f32 %v715_v26, %v703_v18 }
 0x15b   : > { %v724_v31 = vmul.f32 0.7978846, %v720_v27  ;;  %v722_v32 = vadd.f32 %v718_v28, %v702_v15 }
 0x15c   : > { %v725_v33 = vmul.f32 0.7978846, %v721_v29  ;;  %v723_v34 = vadd.f32 %v719_v30, %v703_v18 }
 0x15d   : > { %1055 = vtanh.f32 %v724_v31  ;;  %v726_v35 = vmul.f32 0.7978846, %v722_v32 }
 0x15e   : > { %1057 = vtanh.f32 %v725_v33  ;;  %v727_v36 = vmul.f32 0.7978846, %v723_v34 }
 0x15f   : > { %1059 = vtanh.f32 %v726_v35 }
 0x160   : > { %1061 = vtanh.f32 %v727_v36 }
 0x167   : > { %v1056_v37 = vpop.eup %1055 }
 0x168   : > { %v1058_v38 = vpop.eup %1057  ;;  %v732_v40 = vadd.f32 1.0, %v1056_v37 }
 0x169   : > { %v1060_v41 = vpop.eup %1059  ;;  %v733_v43 = vadd.f32 1.0, %v1058_v38 }
 0x16a   : > { %v1062_v44 = vpop.eup %1061  ;;  %v736_v45 = vmul.f32 %v732_v40, %v704_v39  ;;  %v734_v47 = vadd.f32 1.0, %v1060_v41 }
 0x16b   : > { %v737_v48 = vmul.f32 %v733_v43, %v705_v42  ;;  %v735_v50 = vadd.f32 1.0, %v1062_v44  ;;  %760 = sbr.rel (!%p1158_p6) target bundleno = 378 (0x17a), region = 82 }
 0x16c   : > { %v738_v51 = vmul.f32 %v734_v47, %v706_v46 }
 0x16d   : > { %v961_v52 = vpack.c.bf16 %v737_v48, %v736_v45  ;;  %v739_v53 = vmul.f32 %v735_v50, %v707_v49 }
 0x16f   : > { %752 = vst [vmem:[%s392_s23] sm:$0xff] %v961_v52  ;;  %v962_v54 = vpack.c.bf16 %v739_v53, %v738_v51 }
 0x171   : > { %753 = vst [vmem:[%s392_s23 + $0x8] sm:$0xff] %v962_v54 }
 0x176   : > { %v796_v55 = vld [vmem:[%s392_s23] sm:$0xff] }
 0x177   : > { %797 = vst [vmem:[%s766_s26] sm:$0xff] %v796_v55 }
 0x178   : > { %v798_v56 = vld [vmem:[%s392_s23 + $0x8] sm:$0xff] }
 0x179   : > { %799 = vst [vmem:[%s766_s26 + $0x20] sm:$0xff] %v798_v56 }
 0x17a PF: > { %s13_s16 = sadd.s32 1, %s1101_s16   ;;  %s1316_s12 = smov %s1089_s13 }
 0x17b   : > { %p10_p12 = scmp.ge.s32.totalorder %s13_s16, 6   ;;  %s1317_s13 = smov %s1163_s22 }
 0x17c   : > { %s1318_s14 = smov %s1097_s15  ;;  %s1319_s15 = smov %s1321_s17 }
 0x17d   :  { %12 = sbr.rel (!%p10_p12) target bundleno = 3 (0x3), region = 157 }

// kernel: vit_forward.40
= control target key start
LH: loop header
LB: loop body
LE: loop exit
PB: predicated region body
PF: predicated region fallthrough
CT: control target
= control target key end

     0   :  { %s1054_s15 = smov 0   ;;  %s1056_s16 = smov 0   ;;  %s1177_s0 = inlined_call_operand.vmem [shape: bf16[16,1024], index: 0, kind: input, shape index: {}]   ;;  %s1178_s1 = inlined_call_operand.vmem [shape: bf16[1024,256], index: 1, kind: input, shape index: {}]   ;;  %s1179_s2 = inlined_call_operand.vmem [shape: f32[1,256], index: 2, kind: input, shape index: {}]   ;;  %s1180_s3 = inlined_call_operand.vmem [shape: bf16[16,256], index: 3, kind: input, shape index: {}]   ;;  %s1181_s4 = inlined_call_operand.vmem [shape: bf16[16,256], index: 4, kind: output, shape index: {}]  }
   0x1   :  { %s1058_s17 = smov 0   ;;  %s1060_s18 = smov 0  }
   0x2   :  { %s1062_s19 = smov 0  }
   0x3 LB: > { %s26_s20 = sadd.s32 1, %s1022_s18  ;;  %p49_p1 = scmp.ne.s32.totalorder %s1014_s16, %s1010_s15  ;;  %s1026_s19 = sphi %s1062_s19, %s14_s19   ;;  %s1022_s18 = sphi %s1060_s18, %s1185_s18   ;;  %s1018_s17 = sphi %s1058_s17, %s1184_s17   ;;  %s1014_s16 = sphi %s1056_s16, %s1183_s16   ;;  %s1010_s15 = sphi %s1054_s15, %s1182_s15  }
   0x4   : > { %p27_p0 = scmp.ge.s32.totalorder %s26_s20, 4  ;;  %p50_p2 = scmp.eq.s32.totalorder %s1026_s19, 0 }
   0x5   : > { %s42_s22 = sadd.s32 1, %s1014_s16  ;;  %p841_p5 = scmp.ge.s32.totalorder %s1026_s19, 4 }
   0x6   : > { %s1187_s20 = smov (%p27_p0, %s26_s20), 0  ;;  %p51_p3 = por %p50_p2, %p49_p1 }
   0x7   : > { %s38_s21 = ssub.s32 %s1022_s18, %s1187_s20  ;;  %208 = sbr.rel (%p841_p5) target bundleno = 21 (0x15), region = 24 }
   0x8   : > { %p40_p4 = scmp.eq.s32.totalorder %s38_s21, 0 }
   0xa   : > { %s1089_s23 = scalar_select %p40_p4, %s1014_s16, %s42_s22  }
   0xe   : > { %211 = sbr.rel (!%p51_p3) target bundleno = 21 (0x15), region = 28  ;;  %s213_s24 = sand.u32 (%p51_p3), 1, %s1014_s16  }
   0xf   : > { %s892_s25 = sshll.u32 (%p51_p3), %s1022_s18, 3  ;;  %s842_s26 = sshll.u32 (%p51_p3), %s213_s24, 4 }
  0x10   : > { %s221_s29 = scalar_lea.vmem (%p51_p3), %s1177_s0, %s892_s25  ;;  %s215_s30 = scalar_lea.vmem (%p51_p3), [#allocation3], %s842_s26 }
  0x11   : > { %v251_v0 = vld [vmem:[%s221_s29] sm:$0xff] (%p51_p3) }
  0x12   : > { %v253_v1 = vld [vmem:[%s221_s29 + $0x20] sm:$0xff] (%p51_p3)  ;;  %252 = vst [vmem:[%s215_s30] sm:$0xff] (%p51_p3), %v251_v0 }
  0x13   : > { %254 = vst [vmem:[%s215_s30 + $0x8] sm:$0xff] (%p51_p3), %v253_v1 }
  0x15 PF: > { %p845_p6 = scmp.ge.s32.totalorder %s1026_s19, 1  ;;  %p274_p7 = scmp.lt.s32.totalorder %s1026_s19, 5 }
  0x17   : > { %p275_p8 = pnand %p845_p6, %p274_p7 }
  0x18   : > { %s281_s5 = sand.u32 (!%p275_p8), 1, %s1010_s15   ;;  %s847_s6 = sshll.u32 (!%p275_p8), %s1018_s17, 5 }
  0x19   : > { %278 = sbr.rel (%p275_p8) target bundleno = 336 (0x150), region = 70  ;;  %s1101_s7 = sshll.u32 (!%p275_p8), %s281_s5, 4 }
  0x1a   : > { %p339_p9 = scmp.lt.s32.totalorder (!%p275_p8), %s847_s6, 127  ;;  %s283_s12 = scalar_lea.vmem (!%p275_p8), [#allocation3], %s1101_s7 }
  0x1b   : > { %p850_p10 = scmp.ne.s32.totalorder (!%p275_p8), %s1018_s17, 0 }
  0x20   : > { %s1189_s6 = smov (!%p339_p9, %s847_s6), 127  ;;  %381 = sbr.rel (%p850_p10) target bundleno = 39 (0x27), region = 78 }
  0x21   : > { %s893_s8 = sshll.u32 %s1189_s6, 3  ;;  %v1028_v2 = vmov (!%p850_p10), 0.0  }
  0x22   : > { %s1106_s11 = scalar_lea.vmem %s1178_s1, %s893_s8  ;;  %382 = vst [vmem:[#allocation2] sm:$0xff] (!%p850_p10), %v1028_v2  ;;  %383 = vst [vmem:[#allocation2 + $0x8] sm:$0xff] (!%p850_p10), %v1028_v2 }
  0x23   : > { %384 = vst [vmem:[#allocation2 + $0x10] sm:$0xff] (!%p850_p10), %v1028_v2  ;;  %385 = vst [vmem:[#allocation2 + $0x18] sm:$0xff] (!%p850_p10), %v1028_v2 }
  0x27 PF: > { %v937_v3 = vld [vmem:[%s1106_s11 + $0x4] ss:$8 sps:$4 sm:$0xff]   ;;  %v939_v4 = vld [vmem:[%s1106_s11] ss:$8 sps:$4 sm:$0xff]   ;;  %v940_v5 = vld [vmem:[%s1106_s11 + $0x14] ss:$8 sps:$4 sm:$0xff]  }
  0x28   : > { %594 = vmatprep.subr.bf16.mxu0 %v937_v3  ;;  %v942_v6 = vld [vmem:[%s1106_s11 + $0x10] ss:$8 sps:$4 sm:$0xff]   ;;  %v943_v7 = vld [vmem:[%s1106_s11 + $0x24] ss:$8 sps:$4 sm:$0xff]   ;;  %v945_v8 = vld [vmem:[%s1106_s11 + $0x20] ss:$8 sps:$4 sm:$0xff]  }
  0x29   : > { %595 = vmatpush1.bf16.msra.mxu0 %v939_v4  ;;  %v946_v9 = vld [vmem:[%s1106_s11 + $0x34] ss:$8 sps:$4 sm:$0xff]   ;;  %v948_v10 = vld [vmem:[%s1106_s11 + $0x30] ss:$8 sps:$4 sm:$0xff]   ;;  %v949_v11 = vld [vmem:[%s1106_s11 + $0x44] ss:$8 sps:$4 sm:$0xff]  }
  0x2a   : > { %596 = vmatprep.subr.bf16.mxu0 %v940_v5  ;;  %v951_v12 = vld [vmem:[%s1106_s11 + $0x40] ss:$8 sps:$4 sm:$0xff]   ;;  %v952_v13 = vld [vmem:[%s1106_s11 + $0x54] ss:$8 sps:$4 sm:$0xff]   ;;  %v954_v14 = vld [vmem:[%s1106_s11 + $0x50] ss:$8 sps:$4 sm:$0xff]  }
  0x2b   : > { %v955_v15 = vld [vmem:[%s1106_s11 + $0x64] ss:$8 sps:$4 sm:$0xff]   ;;  %v957_v17 = vld [vmem:[%s1106_s11 + $0x60] ss:$8 sps:$4 sm:$0xff]   ;;  %v958_v18 = vld [vmem:[%s1106_s11 + $0x74] ss:$8 sps:$4 sm:$0xff]  }
  0x2c   : > { %v987_v16 = vld [vmem:[%s283_s12 + $0x4] ss:$8 sps:$4 sm:$0xff]   ;;  %v960_v19 = vld [vmem:[%s1106_s11 + $0x70] ss:$8 sps:$4 sm:$0xff]   ;;  %v963_v21 = vld [vmem:[%s1106_s11 + $0x80] ss:$8 sps:$4 sm:$0xff]  }
  0x2d   : > { %597 = vmatpush1.bf16.msra.mxu0 %v942_v6  ;;  %626 = vmatprep.mubr.bf16.mxu0 %v987_v16  ;;  %v961_v20 = vld [vmem:[%s1106_s11 + $0x84] ss:$8 sps:$4 sm:$0xff]   ;;  %v964_v22 = vld [vmem:[%s1106_s11 + $0x94] ss:$8 sps:$4 sm:$0xff]   ;;  %v966_v23 = vld [vmem:[%s1106_s11 + $0x90] ss:$8 sps:$4 sm:$0xff]  }
  0x2e   : > { %598 = vmatprep.subr.bf16.mxu0 %v943_v7  ;;  %v967_v24 = vld [vmem:[%s1106_s11 + $0xa4] ss:$8 sps:$4 sm:$0xff]   ;;  %v969_v25 = vld [vmem:[%s1106_s11 + $0xa0] ss:$8 sps:$4 sm:$0xff]   ;;  %v970_v26 = vld [vmem:[%s1106_s11 + $0xb4] ss:$8 sps:$4 sm:$0xff]  }
  0x2f   : > { %v972_v27 = vld [vmem:[%s1106_s11 + $0xb0] ss:$8 sps:$4 sm:$0xff]   ;;  %v973_v28 = vld [vmem:[%s1106_s11 + $0xc4] ss:$8 sps:$4 sm:$0xff]   ;;  %v975_v29 = vld [vmem:[%s1106_s11 + $0xc0] ss:$8 sps:$4 sm:$0xff]  }
  0x30   : > { %v976_v30 = vld [vmem:[%s1106_s11 + $0xd4] ss:$8 sps:$4 sm:$0xff]   ;;  %v978_v31 = vld [vmem:[%s1106_s11 + $0xd0] ss:$8 sps:$4 sm:$0xff]   ;;  %v979_v32 = vld [vmem:[%s1106_s11 + $0xe4] ss:$8 sps:$4 sm:$0xff]  }
  0x31   : > { %599 = vmatpush1.bf16.msra.mxu0 %v945_v8  ;;  %v981_v33 = vld [vmem:[%s1106_s11 + $0xe0] ss:$8 sps:$4 sm:$0xff]   ;;  %v982_v34 = vld [vmem:[%s1106_s11 + $0xf4] ss:$8 sps:$4 sm:$0xff]   ;;  %v984_v35 = vld [vmem:[%s1106_s11 + $0xf0] ss:$8 sps:$4 sm:$0xff]  }
  0x32   : > { %600 = vmatprep.subr.bf16.mxu0 %v946_v9  ;;  %v985_v36 = vld [vmem:[%s283_s12] ss:$8 sps:$4 sm:$0xff]   ;;  %p885_p11 = scmp.ne.s32.totalorder %s1018_s17, 3 }
  0x33   : > { %v386_v37 = vld [vmem:[#allocation2] sm:$0xff]  ;;  %v387_v38 = vld [vmem:[#allocation2 + $0x8] sm:$0xff]  ;;  %v388_v40 = vld [vmem:[#allocation2 + $0x10] sm:$0xff]  ;;  %v655_v49 = vlaneseq (!%p885_p11) }
  0x34   : > { %v389_v43 = vld [vmem:[#allocation2 + $0x18] sm:$0xff]  ;;  %v669_v51 = vld [vmem:[%s1180_s3] sm:$0xff] (!%p885_p11)  ;;  %v670_v53 = vld [vmem:[%s1180_s3 + $0x8] sm:$0xff] (!%p885_p11) }
  0x35   : > { %601 = vmatpush1.bf16.msra.mxu0 %v948_v10  ;;  %v656_v50 = vshrl.u32 (!%p885_p11), %v655_v49, 7  ;;  %v653_v52 = vld [vmem:[%s1179_s2] sm:$0x3] (!%p885_p11)  ;;  %v671_v58 = vunpack.c.l.bf16 (!%p885_p11), %v669_v51  ;;  %v672_v59 = vunpack.c.h.bf16 (!%p885_p11), %v669_v51  ;;  %v673_v0 = vunpack.c.l.bf16 (!%p885_p11), %v670_v53 }
  0x36   : > { %602 = vmatprep.subr.bf16.mxu0 %v949_v11  ;;  %v674_v1 = vunpack.c.h.bf16 (!%p885_p11), %v670_v53 }
  0x37   : > { %v657_v55 = vsub.s32 (!%p885_p11), 0, %v656_v50  ;;  %v661_v56 = vsub.s32 (!%p885_p11), 1, %v656_v50 }
  0x39   : > { %603 = vmatpush1.bf16.msra.mxu0 %v951_v12  ;;  %v658_v62 = vrot.slane (!%p885_p11), %v653_v52, %v657_v55  ;;  %v662_v63 = vrot.slane (!%p885_p11), %v653_v52, %v661_v56 }
  0x3a   : > { %604 = vmatprep.subr.bf16.mxu0 %v952_v13 }
  0x3d   : > { %605 = vmatpush1.bf16.msra.mxu0 %v954_v14 }
  0x3e   : > { %606 = vmatprep.subr.bf16.mxu0 %v955_v15 }
  0x41   : > { %607 = vmatpush1.bf16.msra.mxu0 %v957_v17 }
  0x42   : > { %608 = vmatprep.subr.bf16.mxu0 %v958_v18 }
  0x45   : > { %609 = vmatpush1.bf16.msra.mxu0 %v960_v19 }
  0x46   : > { %610 = vmatprep.subr.bf16.mxu0 %v961_v20 }
  0x49   : > { %611 = vmatpush1.bf16.msra.mxu0 %v963_v21 }
  0x4a   : > { %612 = vmatprep.subr.bf16.mxu0 %v964_v22 }
  0x4d   : > { %613 = vmatpush1.bf16.msra.mxu0 %v966_v23 }
  0x4e   : > { %614 = vmatprep.subr.bf16.mxu0 %v967_v24 }
  0x51   : > { %615 = vmatpush1.bf16.msra.mxu0 %v969_v25 }
  0x52   : > { %616 = vmatprep.subr.bf16.mxu0 %v970_v26 }
  0x55   : > { %617 = vmatpush1.bf16.msra.mxu0 %v972_v27 }
  0x56   : > { %618 = vmatprep.subr.bf16.mxu0 %v973_v28 }
  0x59   : > { %619 = vmatpush1.bf16.msra.mxu0 %v975_v29 }
  0x5a   : > { %620 = vmatprep.subr.bf16.mxu0 %v976_v30 }
  0x5d   : > { %621 = vmatpush1.bf16.msra.mxu0 %v978_v31 }
  0x5e   : > { %622 = vmatprep.subr.bf16.mxu0 %v979_v32 }
  0x61   : > { %623 = vmatpush1.bf16.msra.mxu0 %v981_v33 }
  0x62   : > { %624 = vmatprep.subr.bf16.mxu0 %v982_v34 }
  0x65   : > { %625 = vmatpush1.bf16.msra.mxu0 %v984_v35 }
  0x68   : > { %627 = vmatmul.mubr.bf16.vlgmr.msra.gmra.mrb[0].mxu0 %v985_v36 }
 0x13b   : > { %v628_v39 = vpop.f32.mrb[0].mxu0  ;;  %648 = sbr.rel (%p885_p11) target bundleno = 336 (0x150), region = 82 }
 0x13c   : > { %v637_v41 = vadd.f32 %v628_v39, %v386_v37  ;;  %v630_v42 = vpop.f32.mrb[1].mxu0 }
 0x13d   : > { %v638_v44 = vadd.f32 %v630_v42, %v387_v38  ;;  %v632_v45 = vpop.f32.mrb[2].mxu0 }
 0x13e   : > { %641 = vst [vmem:[#allocation2] sm:$0xff] %v637_v41  ;;  %v639_v46 = vadd.f32 %v632_v45, %v388_v40  ;;  %v634_v47 = vpop.f32.mrb[3].mxu0 }
 0x13f   : > { %642 = vst [vmem:[#allocation2 + $0x8] sm:$0xff] %v638_v44  ;;  %v640_v48 = vadd.f32 %v634_v47, %v389_v43 }
 0x140   : > { %643 = vst [vmem:[#allocation2 + $0x10] sm:$0xff] %v639_v46 }
 0x141   : > { %644 = vst [vmem:[#allocation2 + $0x18] sm:$0xff] %v640_v48 }
 0x145   : > { %v649_v54 = vld [vmem:[#allocation2] sm:$0xff] }
 0x146   : > { %v650_v57 = vld [vmem:[#allocation2 + $0x8] sm:$0xff]  ;;  %v665_v2 = vadd.f32 %v658_v62, %v649_v54 }
 0x147   : > { %v651_v60 = vld [vmem:[#allocation2 + $0x10] sm:$0xff]  ;;  %v666_v3 = vadd.f32 %v662_v63, %v650_v57 }
 0x148   : > { %v652_v61 = vld [vmem:[#allocation2 + $0x18] sm:$0xff]  ;;  %v667_v4 = vadd.f32 %v658_v62, %v651_v60  ;;  %v675_v6 = vadd.f32 %v671_v58, %v665_v2 }
 0x149   : > { %v668_v5 = vadd.f32 %v662_v63, %v652_v61  ;;  %v676_v7 = vadd.f32 %v672_v59, %v666_v3 }
 0x14a   : > { %v677_v8 = vadd.f32 %v673_v0, %v667_v4 }
 0x14b   : > { %v678_v9 = vadd.f32 %v674_v1, %v668_v5  ;;  %v894_v10 = vpack.c.bf16 %v676_v7, %v675_v6 }
 0x14d   : > { %v895_v11 = vpack.c.bf16 %v678_v9, %v677_v8  ;;  %691 = vst [vmem:[%s1181_s4] sm:$0xff] %v894_v10 }
 0x14f   : > { %692 = vst [vmem:[%s1181_s4 + $0x8] sm:$0xff] %v895_v11 }
 0x150 PF: > { %s14_s19 = sadd.s32 1, %s1026_s19   ;;  %s1182_s15 = smov %s1014_s16 }
 0x151   : > { %p11_p12 = scmp.ge.s32.totalorder %s14_s19, 6   ;;  %s1183_s16 = smov %s1089_s23 }
 0x152   : > { %s1184_s17 = smov %s1022_s18  ;;  %s1185_s18 = smov %s1187_s20 }
 0x153   :  { %13 = sbr.rel (!%p11_p12) target bundleno = 3 (0x3), region = 126 }

// kernel: vit_forward.63
= control target key start
LH: loop header
LB: loop body
LE: loop exit
PB: predicated region body
PF: predicated region fallthrough
CT: control target
= control target key end

     0   :  { %s410_s1 = inlined_call_operand.vmem [shape: bf16[256,128], index: 1, kind: input, shape index: {}]   ;;  %s411_s0 = inlined_call_operand.vmem [shape: bf16[16,256], index: 0, kind: input, shape index: {}]   ;;  %s412_s2 = inlined_call_operand.vmem [shape: f32[1,128], index: 2, kind: input, shape index: {}]   ;;  %s413_s3 = inlined_call_operand.vmem [shape: f32[16,128], index: 3, kind: output, shape index: {0}]   ;;  %s414_s4 = inlined_call_operand.vmem [shape: f32[16,128], index: 4, kind: output, shape index: {1}]  }
   0x1   :  { %v289_v0 = vld [vmem:[%s410_s1 + $0x40] sm:$0xff]   ;;  %v291_v2 = vld [vmem:[%s410_s1 + $0x48] sm:$0xff]   ;;  %v293_v4 = vld [vmem:[%s410_s1 + $0x50] sm:$0xff]  }
   0x2   :  { %v290_v1 = vld [vmem:[%s410_s1] sm:$0xff]   ;;  %267 = vmatprep.subr.bf16.mxu0 %v289_v0  ;;  %v292_v3 = vld [vmem:[%s410_s1 + $0x8] sm:$0xff]   ;;  %v294_v5 = vld [vmem:[%s410_s1 + $0x10] sm:$0xff]  }
   0x3   :  { %268 = vmatpush3.bf16.msra.mxu0 %v290_v1  ;;  %v295_v6 = vld [vmem:[%s410_s1 + $0x58] sm:$0xff]   ;;  %v297_v8 = vld [vmem:[%s410_s1 + $0x60] sm:$0xff]   ;;  %v299_v10 = vld [vmem:[%s410_s1 + $0x68] sm:$0xff]  }
   0x4   :  { %269 = vmatprep.subr.bf16.mxu0 %v291_v2  ;;  %v296_v7 = vld [vmem:[%s410_s1 + $0x18] sm:$0xff]   ;;  %v298_v9 = vld [vmem:[%s410_s1 + $0x20] sm:$0xff]   ;;  %v300_v12 = vld [vmem:[%s410_s1 + $0x28] sm:$0xff]  }
   0x5   :  { %v307_v11 = vld [vmem:[%s411_s0 + $0x4] ss:$8 sps:$4 sm:$0xff]   ;;  %v301_v13 = vld [vmem:[%s410_s1 + $0x70] sm:$0xff]   ;;  %v303_v15 = vld [vmem:[%s410_s1 + $0x78] sm:$0xff]  }
   0x6   :  { %197 = vmatprep.mubr.bf16.mxu0 %v307_v11  ;;  %v302_v14 = vld [vmem:[%s410_s1 + $0x30] sm:$0xff]   ;;  %v304_v16 = vld [vmem:[%s410_s1 + $0x38] sm:$0xff]   ;;  %v305_v17 = vld [vmem:[%s411_s0] ss:$8 sps:$4 sm:$0xff]  }
   0x7   :  { %270 = vmatpush3.bf16.msra.mxu0 %v292_v3  ;;  %v266_v20 = vld [vmem:[%s412_s2] ss:$0 sm:$0xff] }
   0x8   :  { %271 = vmatprep.subr.bf16.mxu0 %v293_v4 }
   0xb   :  { %272 = vmatpush3.bf16.msra.mxu0 %v294_v5 }
   0xc   :  { %273 = vmatprep.subr.bf16.mxu0 %v295_v6 }
   0xf   :  { %274 = vmatpush3.bf16.msra.mxu0 %v296_v7 }
  0x10   :  { %275 = vmatprep.subr.bf16.mxu0 %v297_v8 }
  0x13   :  { %276 = vmatpush3.bf16.msra.mxu0 %v298_v9 }
  0x14   :  { %277 = vmatprep.subr.bf16.mxu0 %v299_v10 }
  0x17   :  { %278 = vmatpush3.bf16.msra.mxu0 %v300_v12 }
  0x18   :  { %279 = vmatprep.subr.bf16.mxu0 %v301_v13 }
  0x1b   :  { %280 = vmatpush3.bf16.msra.mxu0 %v302_v14 }
  0x1c   :  { %281 = vmatprep.subr.bf16.mxu0 %v303_v15 }
  0x1f   :  { %282 = vmatpush3.bf16.msra.mxu0 %v304_v16 }
  0x22   :  { %198 = vmatmul.mubr.bf16.vlgmr.msra.gmra.mrb[0].mxu0 %v305_v17 }
  0xf5   :  { %v283_v18 = vpop.f32.mrb[0].mxu0 }
  0xf6   :  { %v284_v19 = vpop.f32.mrb[1].mxu0 }
  0xf7   :  { %v285_v21 = vadd.f32 %v284_v19, %v283_v18  ;;  %v286_v22 = vpop.f32.mrb[2].mxu0 }
  0xf8   :  { %v287_v23 = vpop.f32.mrb[3].mxu0 }
  0xf9   :  { %v222_v24 = vadd.f32 %v285_v21, %v266_v20  ;;  %v288_v25 = vadd.f32 %v287_v23, %v286_v22 }
  0xfb   :  { %224 = vst [vmem:[%s413_s3] sm:$0xff] %v222_v24  ;;  %v226_v26 = vsub.f32 0.0, %v222_v24  ;;  %v223_v27 = vadd.f32 %v288_v25, %v266_v20 }
  0xfd   :  { %v228_v28 = vmul.f32 1.442695, %v226_v26  ;;  %225 = vst [vmem:[%s413_s3 + $0x8] sm:$0xff] %v223_v27  ;;  %v227_v29 = vsub.f32 0.0, %v223_v27 }
  0xff   :  { %308 = vpow2.f32 %v228_v28  ;;  %v230_v30 = vmul.f32 1.442695, %v227_v29 }
 0x101   :  { %310 = vpow2.f32 %v230_v30 }
 0x109   :  { %v309_v31 = vpop.eup %308 }
 0x10a   :  { %v232_v32 = vadd.f32 1.0, %v309_v31 }
 0x10b   :  { %v311_v33 = vpop.eup %310 }
 0x10c   :  { %312 = vrcp.f32 %v232_v32  ;;  %v233_v34 = vadd.f32 1.0, %v311_v33 }
 0x10e   :  { %314 = vrcp.f32 %v233_v34 }
 0x116   :  { %v313_v35 = vpop.eup %312 }
 0x117   :  { %238 = vst [vmem:[%s414_s4] sm:$0xff] %v313_v35 }
 0x118   :  { %v315_v36 = vpop.eup %314 }
 0x119   :  { %239 = vst [vmem:[%s414_s4 + $0x8] sm:$0xff] %v315_v36 }

</bundles_post_ra>
